<compile_context>
chip_gen: v7x
topology: tpu7x:2x2x1
jax: 0.10.0
libtpu: 0.0.40
codegen_flags: <defaults>
</compile_context>

<pallas_src>
import math
import functools

import jax
import jax.numpy as jnp
from jax import lax
from jax.experimental import pallas as pl
from jax.experimental.pallas import tpu as pltpu


# ----------------------------------------------------------------------------
# helpers
# ----------------------------------------------------------------------------
def _round_up(x, m):
    return ((x + m - 1) // m) * m


def _pick_seq_tile(s):
    for t in (256, 128, 64, 32, 16, 8):
        if s % t == 0:
            return t
    return s  # ragged small S: single full-row tile (allowed: equals full dim)


PARAM_ORDER = ("wq", "bq", "wk", "bk", "wv", "bv", "wo", "bo",
               "w1", "b1", "w2", "b2", "g1", "be1", "g2", "be2")


# ----------------------------------------------------------------------------
# kernel: grid = (batch, query-tile)
# ----------------------------------------------------------------------------
def decoder_block_kernel(
        x_full_ref, x_q_ref,
        wq_ref, bq_ref, wk_ref, bk_ref, wv_ref, bv_ref, wo_ref, bo_ref,
        w1_ref, b1_ref, w2_ref, b2_ref,
        g1_ref, be1_ref, g2_ref, be2_ref,
        o_ref,
        k_scr, v_scr, acc_ref,
        *, num_heads, head_dim_p, scale, d_real, eps, tile_f, n_f_tiles):
    sq = pl.program_id(1)

    # ---- K/V projections: compute once per batch row, cache in bf16 VMEM ----
    @pl.when(sq == 0)
    def _project_kv():
        x_all = x_full_ref[0].astype(jnp.bfloat16)                      # (S, Dp)
        k = jnp.dot(x_all, wk_ref[...],
                    preferred_element_type=jnp.float32) + bk_ref[...]
        v = jnp.dot(x_all, wv_ref[...],
                    preferred_element_type=jnp.float32) + bv_ref[...]
        k_scr[...] = k.astype(jnp.bfloat16)
        v_scr[...] = v.astype(jnp.bfloat16)

    # ---- Q projection for this query tile ----
    x_q = x_q_ref[0].astype(jnp.float32)                                # (tS, Dp)
    q = jnp.dot(x_q.astype(jnp.bfloat16), wq_ref[...],
                preferred_element_type=jnp.float32) + bq_ref[...]
    q = q.astype(jnp.bfloat16)

    # ---- attention: per-head loop, concat fused into the Wo projection ----
    # Only one head's logits / probabilities are live at a time because every
    # head immediately accumulates into the f32 VMEM scratch.
    acc_ref[...] = jnp.zeros_like(acc_ref)
    for h in range(num_heads):
        lo = h * head_dim_p                                  # static offsets
        qh = q[:, lo:lo + head_dim_p]                        # (tS, hdp) bf16
        kh = k_scr[:, lo:lo + head_dim_p]                    # (S,  hdp) bf16
        vh = v_scr[:, lo:lo + head_dim_p]                    # (S,  hdp) bf16
        logits = lax.dot_general(qh, kh, (((1,), (1,)), ((), ())),
                                 preferred_element_type=jnp.float32) * scale
        m = jnp.max(logits, axis=-1, keepdims=True)
        e = jnp.exp(logits - m)
        p = e * pl.reciprocal(jnp.sum(e, axis=-1, keepdims=True), approx=True)
        hv = jnp.dot(p.astype(jnp.bfloat16), vh,
                     preferred_element_type=jnp.float32)     # (tS, hdp) f32
        acc_ref[...] += jnp.dot(hv.astype(jnp.bfloat16),
                                wo_ref[lo:lo + head_dim_p, :],
                                preferred_element_type=jnp.float32)
    attn_out = acc_ref[...] + bo_ref[...]                    # (tS, Dp) f32

    inv_d = 1.0 / d_real

    def layernorm(y, g, b):
        # single pass: sum + sum-of-squares; padded lanes of y are exactly 0
        # and gamma/beta are zero there, so the padded lanes stay 0.
        s = jnp.sum(y, axis=-1, keepdims=True)
        ss = jnp.sum(y * y, axis=-1, keepdims=True)
        mu = s * inv_d
        var = ss * inv_d - mu * mu
        return (y - mu) * lax.rsqrt(var + eps) * g + b

    # ---- residual + norm1 (dropout p=0.0 == identity) ----
    x1 = layernorm(x_q + attn_out, g1_ref[...], be1_ref[...])

    # ---- feed-forward, tiled over the hidden dim, f32 accumulation ----
    x1_bf = x1.astype(jnp.bfloat16)
    acc_ref[...] = jnp.zeros_like(acc_ref)
    for fc in range(n_f_tiles):
        fo = fc * tile_f                                     # static offsets
        h1 = jnp.dot(x1_bf, w1_ref[:, fo:fo + tile_f],
                     preferred_element_type=jnp.float32) + b1_ref[:, fo:fo + tile_f]
        h1 = jnp.maximum(h1, 0.0).astype(jnp.bfloat16)
        acc_ref[...] += jnp.dot(h1, w2_ref[fo:fo + tile_f, :],
                                preferred_element_type=jnp.float32)
    ff = acc_ref[...] + b2_ref[...]

    # ---- residual + norm2 ----
    x2 = layernorm(x1 + ff, g2_ref[...], be2_ref[...])
    o_ref[0] = x2.astype(o_ref.dtype)


# ----------------------------------------------------------------------------
# wrapper: pad to lane-dense shapes, build specs, call the kernel
# ----------------------------------------------------------------------------
def _pad_and_cast_params(params, D, F, H, hd, hdp, Dp, Fp):
    """Zero-pad params to lane-dense shapes (per-head scatter for Q/K/V/O).
    Weights (MXU operands) -> bf16; biases / LayerNorm params -> f32."""
    def scat_cols(w):                      # (D, H*hd) -> (Dp, H*hdp)
        out = jnp.zeros((Dp, Dp), jnp.float32)
        for h in range(H):
            out = out.at[:D, h * hdp:h * hdp + hd].set(w[:, h * hd:(h + 1) * hd])
        return out.astype(jnp.bfloat16)

    def scat_rows(w):                      # (H*hd, D) -> (H*hdp, Dp)
        out = jnp.zeros((Dp, Dp), jnp.float32)
        for h in range(H):
            out = out.at[h * hdp:h * hdp + hd, :D].set(w[h * hd:(h + 1) * hd, :])
        return out.astype(jnp.bfloat16)

    def scat_bias(b):                      # (1, H*hd) -> (1, H*hdp)
        out = jnp.zeros((1, Dp), jnp.float32)
        for h in range(H):
            out = out.at[:, h * hdp:h * hdp + hd].set(b[:, h * hd:(h + 1) * hd])
        return out

    def pad2(a, r, c, dt):
        out = jnp.zeros((r, c), jnp.float32)
        out = out.at[:a.shape[0], :a.shape[1]].set(a.astype(jnp.float32))
        return out.astype(dt)

    return {
        "wq": scat_cols(params["wq"]), "bq": scat_bias(params["bq"]),
        "wk": scat_cols(params["wk"]), "bk": scat_bias(params["bk"]),
        "wv": scat_cols(params["wv"]), "bv": scat_bias(params["bv"]),
        "wo": scat_rows(params["wo"]), "bo": pad2(params["bo"], 1, Dp, jnp.float32),
        "w1": pad2(params["w1"], Dp, Fp, jnp.bfloat16),
        "b1": pad2(params["b1"], 1, Fp, jnp.float32),
        "w2": pad2(params["w2"], Fp, Dp, jnp.bfloat16),
        "b2": pad2(params["b2"], 1, Dp, jnp.float32),
        "g1": pad2(params["g1"], 1, Dp, jnp.float32),
        "be1": pad2(params["be1"], 1, Dp, jnp.float32),
        "g2": pad2(params["g2"], 1, Dp, jnp.float32),
        "be2": pad2(params["be2"], 1, Dp, jnp.float32),
    }


def decoder_block(x, params, num_heads, eps=1e-5):
    B, S, D = x.shape
    F = params["w1"].shape[1]
    assert D % num_heads == 0
    hd = D // num_heads

    # pad head_dim so that the packed model dim (H * hdp) is a multiple of 128
    hdp = _round_up(hd, 128 // math.gcd(num_heads, 128))
    Dp = num_heads * hdp
    Fp = _round_up(F, 128)

    tile_s = _pick_seq_tile(S)
    n_sq = S // tile_s
    tile_f = 512 if Fp % 512 == 0 else (256 if Fp % 256 == 0 else 128)
    n_ft = Fp // tile_f

    pp = _pad_and_cast_params(params, D, F, num_heads, hd, hdp, Dp, Fp)
    xp = jnp.zeros((B, S, Dp), x.dtype).at[:, :, :D].set(x)

    kernel = functools.partial(
        decoder_block_kernel,
        num_heads=num_heads, head_dim_p=hdp, scale=1.0 / math.sqrt(hd),
        d_real=float(D), eps=eps, tile_f=tile_f, n_f_tiles=n_ft)

    weight_specs = [pl.BlockSpec(pp[name].shape, lambda b, sq: (0, 0))
                    for name in PARAM_ORDER]
    in_specs = ([pl.BlockSpec((1, S, Dp), lambda b, sq: (b, 0, 0)),       # K/V rows
                 pl.BlockSpec((1, tile_s, Dp), lambda b, sq: (b, sq, 0))]  # Q tile
                + weight_specs)

    # explicit VMEM budget (v7x has 64 MiB / TC; default scoped limit is 32 MiB)
    itemsize = jnp.dtype(x.dtype).itemsize
    est = 2 * 2 * (4 * Dp * Dp + 2 * Dp * Fp)                # bf16 weights, 2 bufs
    est += 2 * (S * Dp + tile_s * Dp) * itemsize             # x views, 2 bufs
    est += 2 * tile_s * Dp * itemsize                        # output, 2 bufs
    est += 2 * 2 * S * Dp + 4 * tile_s * Dp                  # K/V scratch + f32 acc
    vmem_limit = int(min(128 * 1024 * 1024, max(32 * 1024 * 1024, 2 * est)))

    out = pl.pallas_call(
        kernel,
        out_shape=jax.ShapeDtypeStruct((B, S, Dp), x.dtype),
        grid_spec=pltpu.PrefetchScalarGridSpec(
            num_scalar_prefetch=0,
            grid=(B, n_sq),
            in_specs=in_specs,
            out_specs=pl.BlockSpec((1, tile_s, Dp), lambda b, sq: (b, sq, 0)),
            scratch_shapes=[
                pltpu.VMEM((S, Dp), jnp.bfloat16),       # K cache (per batch row)
                pltpu.VMEM((S, Dp), jnp.bfloat16),       # V cache (per batch row)
                pltpu.VMEM((tile_s, Dp), jnp.float32),   # attn / FFN accumulator
            ]),
        compiler_params=pltpu.CompilerParams(
            dimension_semantics=("parallel", "arbitrary"),
            vmem_limit_bytes=vmem_limit),
    )(xp, xp, *[pp[name] for name in PARAM_ORDER])

    # TODO(synk): for a full flash-style kernel at very long S, add an online
    # softmax over K/V tiles instead of materializing (tile_s, S) logits/head.
    return out[:, :, :D]


# ----------------------------------------------------------------------------
# deterministic parameter init (xavier-uniform weights, zero biases, LN = 1/0)
# ----------------------------------------------------------------------------
def xavier_uniform(key, fan_in, fan_out):
    limit = math.sqrt(6.0 / (fan_in + fan_out))
    return jax.random.uniform(key, (fan_in, fan_out), jnp.float32, -limit, limit)


def init_params(key, D, F):
    ks = jax.random.split(key, 6)
    return {
        "wq": xavier_uniform(ks[0], D, D), "bq": jnp.zeros((1, D), jnp.float32),
        "wk": xavier_uniform(ks[1], D, D), "bk": jnp.zeros((1, D), jnp.float32),
        "wv": xavier_uniform(ks[2], D, D), "bv": jnp.zeros((1, D), jnp.float32),
        "wo": xavier_uniform(ks[3], D, D), "bo": jnp.zeros((1, D), jnp.float32),
        "w1": xavier_uniform(ks[4], D, F), "b1": jnp.zeros((1, F), jnp.float32),
        "w2": xavier_uniform(ks[5], F, D), "b2": jnp.zeros((1, D), jnp.float32),
        "g1": jnp.ones((1, D), jnp.float32), "be1": jnp.zeros((1, D), jnp.float32),
        "g2": jnp.ones((1, D), jnp.float32), "be2": jnp.zeros((1, D), jnp.float32),
    }


# ----------------------------------------------------------------------------
# pure-JAX reference (mxu_dtype=bf16 mirrors the kernel's MXU precision)
# ----------------------------------------------------------------------------
def decoder_block_ref(x, params, num_heads, eps=1e-5, mxu_dtype=jnp.float32):
    B, S, D = x.shape
    hd = D // num_heads

    def mm(a, b):
        return jnp.dot(a.astype(mxu_dtype), b.astype(mxu_dtype),
                       preferred_element_type=jnp.float32)

    q = mm(x, params["wq"]) + params["bq"]
    k = mm(x, params["wk"]) + params["bk"]
    v = mm(x, params["wv"]) + params["bv"]
    q = q.reshape(B, S, num_heads, hd).transpose(0, 2, 1, 3)
    k = k.reshape(B, S, num_heads, hd).transpose(0, 2, 1, 3)
    v = v.reshape(B, S, num_heads, hd).transpose(0, 2, 1, 3)
    logits = jnp.einsum("bhqd,bhkd->bhqk", q.astype(mxu_dtype), k.astype(mxu_dtype),
                        preferred_element_type=jnp.float32) / math.sqrt(hd)
    attn = jax.nn.softmax(logits, axis=-1)
    vals = jnp.einsum("bhqk,bhkd->bhqd", attn.astype(mxu_dtype), v.astype(mxu_dtype),
                      preferred_element_type=jnp.float32)
    vals = vals.transpose(0, 2, 1, 3).reshape(B, S, D)
    attn_out = mm(vals, params["wo"]) + params["bo"]

    def ln(y, g, b):
        mu = jnp.mean(y, axis=-1, keepdims=True)
        var = jnp.mean((y - mu) ** 2, axis=-1, keepdims=True)
        return (y - mu) * lax.rsqrt(var + eps) * g + b

    x1 = ln(x + attn_out, params["g1"], params["be1"])
    h1 = jnp.maximum(mm(x1, params["w1"]) + params["b1"], 0.0)
    ff = mm(h1, params["w2"]) + params["b2"]
    return ln(x1 + ff, params["g2"], params["be2"])


if __name__ == "__main__":
    B, S, D, H, FF = 2, 8, 32, 4, 64

    key = jax.random.PRNGKey(0)
    kx, kp = jax.random.split(key)
    x = jax.random.normal(kx, (B, S, D), jnp.float32)
    params = init_params(kp, D, FF)

    out = decoder_block(x, params, num_heads=H)
    out = jax.block_until_ready(out)
    assert out.shape == (B, S, D)

    ref = decoder_block_ref(x, params, num_heads=H, mxu_dtype=jnp.bfloat16)
    err = float(jnp.max(jnp.abs(out - ref)))
    assert err < 1e-2, f"mismatch vs reference: max abs err {err}"

    print("KERNEL_OK")
</pallas_src>

<mosaic_0001>
module attributes {stable_mosaic.version = 11 : i64} {
  func.func @decoder_block_kernel(%arg0: i32, %arg1: i32, %arg2: memref<1x8x128xf32, #tpu.memory_space<vmem>>, %arg3: memref<1x8x128xf32, #tpu.memory_space<vmem>>, %arg4: memref<128x128xbf16, #tpu.memory_space<vmem>>, %arg5: memref<1x128xf32, #tpu.memory_space<vmem>>, %arg6: memref<128x128xbf16, #tpu.memory_space<vmem>>, %arg7: memref<1x128xf32, #tpu.memory_space<vmem>>, %arg8: memref<128x128xbf16, #tpu.memory_space<vmem>>, %arg9: memref<1x128xf32, #tpu.memory_space<vmem>>, %arg10: memref<128x128xbf16, #tpu.memory_space<vmem>>, %arg11: memref<1x128xf32, #tpu.memory_space<vmem>>, %arg12: memref<128x128xbf16, #tpu.memory_space<vmem>>, %arg13: memref<1x128xf32, #tpu.memory_space<vmem>>, %arg14: memref<128x128xbf16, #tpu.memory_space<vmem>>, %arg15: memref<1x128xf32, #tpu.memory_space<vmem>>, %arg16: memref<1x128xf32, #tpu.memory_space<vmem>>, %arg17: memref<1x128xf32, #tpu.memory_space<vmem>>, %arg18: memref<1x128xf32, #tpu.memory_space<vmem>>, %arg19: memref<1x128xf32, #tpu.memory_space<vmem>>, %arg20: memref<1x8x128xf32, #tpu.memory_space<vmem>>, %arg21: memref<8x128xbf16, #tpu.memory_space<vmem>>, %arg22: memref<8x128xbf16, #tpu.memory_space<vmem>>, %arg23: memref<8x128xf32, #tpu.memory_space<vmem>>) attributes {dimension_semantics = [#tpu.dimension_semantics<parallel>, #tpu.dimension_semantics<arbitrary>], iteration_bounds = array<i64: 2, 1>, scalar_prefetch = 0 : i64, scratch_operands = 3 : i64, tpu.core_type = #tpu.core_type<tc>, window_params = [{transform_indices = @transform_0, window_bounds = array<i64: 1, 8, 128>}, {transform_indices = @transform_1, window_bounds = array<i64: 1, 8, 128>}, {pipeline_mode = #tpu.pipeline_mode<synchronous>, transform_indices = @transform_2, window_bounds = array<i64: 128, 128>}, {pipeline_mode = #tpu.pipeline_mode<synchronous>, transform_indices = @transform_3, window_bounds = array<i64: 1, 128>}, {pipeline_mode = #tpu.pipeline_mode<synchronous>, transform_indices = @transform_4, window_bounds = array<i64: 128, 128>}, {pipeline_mode = #tpu.pipeline_mode<synchronous>, transform_indices = @transform_5, window_bounds = array<i64: 1, 128>}, {pipeline_mode = #tpu.pipeline_mode<synchronous>, transform_indices = @transform_6, window_bounds = array<i64: 128, 128>}, {pipeline_mode = #tpu.pipeline_mode<synchronous>, transform_indices = @transform_7, window_bounds = array<i64: 1, 128>}, {pipeline_mode = #tpu.pipeline_mode<synchronous>, transform_indices = @transform_8, window_bounds = array<i64: 128, 128>}, {pipeline_mode = #tpu.pipeline_mode<synchronous>, transform_indices = @transform_9, window_bounds = array<i64: 1, 128>}, {pipeline_mode = #tpu.pipeline_mode<synchronous>, transform_indices = @transform_10, window_bounds = array<i64: 128, 128>}, {pipeline_mode = #tpu.pipeline_mode<synchronous>, transform_indices = @transform_11, window_bounds = array<i64: 1, 128>}, {pipeline_mode = #tpu.pipeline_mode<synchronous>, transform_indices = @transform_12, window_bounds = array<i64: 128, 128>}, {pipeline_mode = #tpu.pipeline_mode<synchronous>, transform_indices = @transform_13, window_bounds = array<i64: 1, 128>}, {pipeline_mode = #tpu.pipeline_mode<synchronous>, transform_indices = @transform_14, window_bounds = array<i64: 1, 128>}, {pipeline_mode = #tpu.pipeline_mode<synchronous>, transform_indices = @transform_15, window_bounds = array<i64: 1, 128>}, {pipeline_mode = #tpu.pipeline_mode<synchronous>, transform_indices = @transform_16, window_bounds = array<i64: 1, 128>}, {pipeline_mode = #tpu.pipeline_mode<synchronous>, transform_indices = @transform_17, window_bounds = array<i64: 1, 128>}, {transform_indices = @transform_18, window_bounds = array<i64: 1, 8, 128>}]} {
    %c0_i32 = arith.constant 0 : i32
    %0 = arith.cmpi eq, %arg1, %c0_i32 : i32
    %1 = arith.extui %0 : i1 to i32
    %c0_i32_0 = arith.constant 0 : i32
    %2 = arith.cmpi ne, %1, %c0_i32_0 : i32
    scf.if %2 {
      %c0_116 = arith.constant 0 : index
      %c0_117 = arith.constant 0 : index
      %c0_118 = arith.constant 0 : index
      %187 = vector.load %arg2[%c0_116, %c0_117, %c0_118] : memref<1x8x128xf32, #tpu.memory_space<vmem>>, vector<1x8x128xf32>
      %188 = vector.shape_cast %187 : vector<1x8x128xf32> to vector<8x128xf32>
      %189 = arith.truncf %188 : vector<8x128xf32> to vector<8x128xbf16>
      %c0_119 = arith.constant 0 : index
      %c0_120 = arith.constant 0 : index
      %190 = vector.load %arg6[%c0_119, %c0_120] : memref<128x128xbf16, #tpu.memory_space<vmem>>, vector<128x128xbf16>
      %cst_121 = arith.constant dense<0.000000e+00> : vector<8x128xf32>
      %191 = tpu.matmul %189, %190, %cst_121 {dimension_numbers = #tpu.dot_dimension_numbers<[1], [0], [0], [1], [0, 0, 1, 1], [], []>} : vector<8x128xbf16>, vector<128x128xbf16>, vector<8x128xf32> -> vector<8x128xf32>
      %c0_122 = arith.constant 0 : index
      %c0_123 = arith.constant 0 : index
      %192 = vector.load %arg7[%c0_122, %c0_123] : memref<1x128xf32, #tpu.memory_space<vmem>>, vector<1x128xf32>
      %193 = vector.broadcast %192 : vector<1x128xf32> to vector<8x128xf32>
      %194 = arith.addf %191, %193 : vector<8x128xf32>
      %c0_124 = arith.constant 0 : index
      %c0_125 = arith.constant 0 : index
      %195 = vector.load %arg8[%c0_124, %c0_125] : memref<128x128xbf16, #tpu.memory_space<vmem>>, vector<128x128xbf16>
      %cst_126 = arith.constant dense<0.000000e+00> : vector<8x128xf32>
      %196 = tpu.matmul %189, %195, %cst_126 {dimension_numbers = #tpu.dot_dimension_numbers<[1], [0], [0], [1], [0, 0, 1, 1], [], []>} : vector<8x128xbf16>, vector<128x128xbf16>, vector<8x128xf32> -> vector<8x128xf32>
      %c0_127 = arith.constant 0 : index
      %c0_128 = arith.constant 0 : index
      %197 = vector.load %arg9[%c0_127, %c0_128] : memref<1x128xf32, #tpu.memory_space<vmem>>, vector<1x128xf32>
      %198 = vector.broadcast %197 : vector<1x128xf32> to vector<8x128xf32>
      %199 = arith.addf %196, %198 : vector<8x128xf32>
      %200 = arith.truncf %194 : vector<8x128xf32> to vector<8x128xbf16>
      %c0_129 = arith.constant 0 : index
      %c0_130 = arith.constant 0 : index
      %201 = vector.load %arg21[%c0_129, %c0_130] : memref<8x128xbf16, #tpu.memory_space<vmem>>, vector<8x128xbf16>
      tpu.vector_store %arg21[%c0_129, %c0_130], %200 {strides = array<i32>} : memref<8x128xbf16, #tpu.memory_space<vmem>>, vector<8x128xbf16>,
      %202 = arith.truncf %199 : vector<8x128xf32> to vector<8x128xbf16>
      %c0_131 = arith.constant 0 : index
      %c0_132 = arith.constant 0 : index
      %203 = vector.load %arg22[%c0_131, %c0_132] : memref<8x128xbf16, #tpu.memory_space<vmem>>, vector<8x128xbf16>
      tpu.vector_store %arg22[%c0_131, %c0_132], %202 {strides = array<i32>} : memref<8x128xbf16, #tpu.memory_space<vmem>>, vector<8x128xbf16>,
    } else {
    }
    %c0 = arith.constant 0 : index
    %c0_1 = arith.constant 0 : index
    %c0_2 = arith.constant 0 : index
    %3 = vector.load %arg3[%c0, %c0_1, %c0_2] : memref<1x8x128xf32, #tpu.memory_space<vmem>>, vector<1x8x128xf32>
    %4 = vector.shape_cast %3 : vector<1x8x128xf32> to vector<8x128xf32>
    %5 = arith.truncf %4 : vector<8x128xf32> to vector<8x128xbf16>
    %c0_3 = arith.constant 0 : index
    %c0_4 = arith.constant 0 : index
    %6 = vector.load %arg4[%c0_3, %c0_4] : memref<128x128xbf16, #tpu.memory_space<vmem>>, vector<128x128xbf16>
    %cst = arith.constant dense<0.000000e+00> : vector<8x128xf32>
    %7 = tpu.matmul %5, %6, %cst {dimension_numbers = #tpu.dot_dimension_numbers<[1], [0], [0], [1], [0, 0, 1, 1], [], []>} : vector<8x128xbf16>, vector<128x128xbf16>, vector<8x128xf32> -> vector<8x128xf32>
    %c0_5 = arith.constant 0 : index
    %c0_6 = arith.constant 0 : index
    %8 = vector.load %arg5[%c0_5, %c0_6] : memref<1x128xf32, #tpu.memory_space<vmem>>, vector<1x128xf32>
    %9 = vector.broadcast %8 : vector<1x128xf32> to vector<8x128xf32>
    %10 = arith.addf %7, %9 : vector<8x128xf32>
    %11 = arith.truncf %10 : vector<8x128xf32> to vector<8x128xbf16>
    %cst_7 = arith.constant 0.000000e+00 : f32
    %12 = vector.broadcast %cst_7 : f32 to vector<8x128xf32>
    %c0_8 = arith.constant 0 : index
    %c0_9 = arith.constant 0 : index
    %13 = vector.load %arg23[%c0_8, %c0_9] : memref<8x128xf32, #tpu.memory_space<vmem>>, vector<8x128xf32>
    tpu.vector_store %arg23[%c0_8, %c0_9], %12 {strides = array<i32>} : memref<8x128xf32, #tpu.memory_space<vmem>>, vector<8x128xf32>,
    %14 = vector.extract_strided_slice %11 {offsets = [0, 0], sizes = [8, 32], strides = [1, 1]} : vector<8x128xbf16> to vector<8x32xbf16>
    %c0_10 = arith.constant 0 : index
    %c0_11 = arith.constant 0 : index
    %15 = vector.load %arg21[%c0_10, %c0_11] : memref<8x128xbf16, #tpu.memory_space<vmem>>, vector<8x32xbf16>
    %c0_12 = arith.constant 0 : index
    %c0_13 = arith.constant 0 : index
    %16 = vector.load %arg22[%c0_12, %c0_13] : memref<8x128xbf16, #tpu.memory_space<vmem>>, vector<8x32xbf16>
    %cst_14 = arith.constant dense<0.000000e+00> : vector<8x8xf32>
    %17 = tpu.matmul %14, %15, %cst_14 {dimension_numbers = #tpu.dot_dimension_numbers<[1], [1], [0], [0], [0, 0, 1, 0], [], []>} : vector<8x32xbf16>, vector<8x32xbf16>, vector<8x8xf32> -> vector<8x8xf32>
    %cst_15 = arith.constant 0.353553385 : f32
    %18 = vector.broadcast %cst_15 : f32 to vector<8x8xf32>
    %19 = arith.mulf %17, %18 : vector<8x8xf32>
    %cst_16 = arith.constant dense<0xFF800000> : vector<8xf32>
    %20 = vector.multi_reduction <maximumf>, %19, %cst_16 [1] : vector<8x8xf32> to vector<8xf32>
    %21 = vector.shape_cast %20 : vector<8xf32> to vector<8x1xf32>
    %22 = vector.broadcast %21 : vector<8x1xf32> to vector<8x8xf32>
    %23 = arith.subf %19, %22 : vector<8x8xf32>
    %24 = math.exp %23 : vector<8x8xf32>
    %cst_17 = arith.constant dense<0.000000e+00> : vector<8xf32>
    %25 = vector.multi_reduction <add>, %24, %cst_17 [1] : vector<8x8xf32> to vector<8xf32>
    %26 = vector.shape_cast %25 : vector<8xf32> to vector<8x1xf32>
    %27 = tpu.reciprocal %26 {approx = true} : vector<8x1xf32> -> vector<8x1xf32>
    %28 = vector.broadcast %27 : vector<8x1xf32> to vector<8x8xf32>
    %29 = arith.mulf %24, %28 : vector<8x8xf32>
    %30 = arith.truncf %29 : vector<8x8xf32> to vector<8x8xbf16>
    %cst_18 = arith.constant dense<0.000000e+00> : vector<8x32xf32>
    %31 = tpu.matmul %30, %16, %cst_18 {dimension_numbers = #tpu.dot_dimension_numbers<[1], [0], [0], [1], [0, 0, 1, 1], [], []>} : vector<8x8xbf16>, vector<8x32xbf16>, vector<8x32xf32> -> vector<8x32xf32>
    %c0_19 = arith.constant 0 : index
    %c0_20 = arith.constant 0 : index
    %32 = vector.load %arg23[%c0_19, %c0_20] : memref<8x128xf32, #tpu.memory_space<vmem>>, vector<8x128xf32>
    %33 = arith.truncf %31 : vector<8x32xf32> to vector<8x32xbf16>
    %c0_21 = arith.constant 0 : index
    %c0_22 = arith.constant 0 : index
    %34 = vector.load %arg10[%c0_21, %c0_22] : memref<128x128xbf16, #tpu.memory_space<vmem>>, vector<32x128xbf16>
    %cst_23 = arith.constant dense<0.000000e+00> : vector<8x128xf32>
    %35 = tpu.matmul %33, %34, %cst_23 {dimension_numbers = #tpu.dot_dimension_numbers<[1], [0], [0], [1], [0, 0, 1, 1], [], []>} : vector<8x32xbf16>, vector<32x128xbf16>, vector<8x128xf32> -> vector<8x128xf32>
    %36 = arith.addf %32, %35 : vector<8x128xf32>
    %c0_24 = arith.constant 0 : index
    %c0_25 = arith.constant 0 : index
    %37 = vector.load %arg23[%c0_24, %c0_25] : memref<8x128xf32, #tpu.memory_space<vmem>>, vector<8x128xf32>
    tpu.vector_store %arg23[%c0_24, %c0_25], %36 {strides = array<i32>} : memref<8x128xf32, #tpu.memory_space<vmem>>, vector<8x128xf32>,
    %38 = vector.extract_strided_slice %11 {offsets = [0, 32], sizes = [8, 32], strides = [1, 1]} : vector<8x128xbf16> to vector<8x32xbf16>
    %c0_26 = arith.constant 0 : index
    %c32 = arith.constant 32 : index
    %39 = vector.load %arg21[%c0_26, %c32] : memref<8x128xbf16, #tpu.memory_space<vmem>>, vector<8x32xbf16>
    %c0_27 = arith.constant 0 : index
    %c32_28 = arith.constant 32 : index
    %40 = vector.load %arg22[%c0_27, %c32_28] : memref<8x128xbf16, #tpu.memory_space<vmem>>, vector<8x32xbf16>
    %cst_29 = arith.constant dense<0.000000e+00> : vector<8x8xf32>
    %41 = tpu.matmul %38, %39, %cst_29 {dimension_numbers = #tpu.dot_dimension_numbers<[1], [1], [0], [0], [0, 0, 1, 0], [], []>} : vector<8x32xbf16>, vector<8x32xbf16>, vector<8x8xf32> -> vector<8x8xf32>
    %cst_30 = arith.constant 0.353553385 : f32
    %42 = vector.broadcast %cst_30 : f32 to vector<8x8xf32>
    %43 = arith.mulf %41, %42 : vector<8x8xf32>
    %cst_31 = arith.constant dense<0xFF800000> : vector<8xf32>
    %44 = vector.multi_reduction <maximumf>, %43, %cst_31 [1] : vector<8x8xf32> to vector<8xf32>
    %45 = vector.shape_cast %44 : vector<8xf32> to vector<8x1xf32>
    %46 = vector.broadcast %45 : vector<8x1xf32> to vector<8x8xf32>
    %47 = arith.subf %43, %46 : vector<8x8xf32>
    %48 = math.exp %47 : vector<8x8xf32>
    %cst_32 = arith.constant dense<0.000000e+00> : vector<8xf32>
    %49 = vector.multi_reduction <add>, %48, %cst_32 [1] : vector<8x8xf32> to vector<8xf32>
    %50 = vector.shape_cast %49 : vector<8xf32> to vector<8x1xf32>
    %51 = tpu.reciprocal %50 {approx = true} : vector<8x1xf32> -> vector<8x1xf32>
    %52 = vector.broadcast %51 : vector<8x1xf32> to vector<8x8xf32>
    %53 = arith.mulf %48, %52 : vector<8x8xf32>
    %54 = arith.truncf %53 : vector<8x8xf32> to vector<8x8xbf16>
    %cst_33 = arith.constant dense<0.000000e+00> : vector<8x32xf32>
    %55 = tpu.matmul %54, %40, %cst_33 {dimension_numbers = #tpu.dot_dimension_numbers<[1], [0], [0], [1], [0, 0, 1, 1], [], []>} : vector<8x8xbf16>, vector<8x32xbf16>, vector<8x32xf32> -> vector<8x32xf32>
    %c0_34 = arith.constant 0 : index
    %c0_35 = arith.constant 0 : index
    %56 = vector.load %arg23[%c0_34, %c0_35] : memref<8x128xf32, #tpu.memory_space<vmem>>, vector<8x128xf32>
    %57 = arith.truncf %55 : vector<8x32xf32> to vector<8x32xbf16>
    %c32_36 = arith.constant 32 : index
    %c0_37 = arith.constant 0 : index
    %58 = vector.load %arg10[%c32_36, %c0_37] : memref<128x128xbf16, #tpu.memory_space<vmem>>, vector<32x128xbf16>
    %cst_38 = arith.constant dense<0.000000e+00> : vector<8x128xf32>
    %59 = tpu.matmul %57, %58, %cst_38 {dimension_numbers = #tpu.dot_dimension_numbers<[1], [0], [0], [1], [0, 0, 1, 1], [], []>} : vector<8x32xbf16>, vector<32x128xbf16>, vector<8x128xf32> -> vector<8x128xf32>
    %60 = arith.addf %56, %59 : vector<8x128xf32>
    %c0_39 = arith.constant 0 : index
    %c0_40 = arith.constant 0 : index
    %61 = vector.load %arg23[%c0_39, %c0_40] : memref<8x128xf32, #tpu.memory_space<vmem>>, vector<8x128xf32>
    tpu.vector_store %arg23[%c0_39, %c0_40], %60 {strides = array<i32>} : memref<8x128xf32, #tpu.memory_space<vmem>>, vector<8x128xf32>,
    %62 = vector.extract_strided_slice %11 {offsets = [0, 64], sizes = [8, 32], strides = [1, 1]} : vector<8x128xbf16> to vector<8x32xbf16>
    %c0_41 = arith.constant 0 : index
    %c64 = arith.constant 64 : index
    %63 = vector.load %arg21[%c0_41, %c64] : memref<8x128xbf16, #tpu.memory_space<vmem>>, vector<8x32xbf16>
    %c0_42 = arith.constant 0 : index
    %c64_43 = arith.constant 64 : index
    %64 = vector.load %arg22[%c0_42, %c64_43] : memref<8x128xbf16, #tpu.memory_space<vmem>>, vector<8x32xbf16>
    %cst_44 = arith.constant dense<0.000000e+00> : vector<8x8xf32>
    %65 = tpu.matmul %62, %63, %cst_44 {dimension_numbers = #tpu.dot_dimension_numbers<[1], [1], [0], [0], [0, 0, 1, 0], [], []>} : vector<8x32xbf16>, vector<8x32xbf16>, vector<8x8xf32> -> vector<8x8xf32>
    %cst_45 = arith.constant 0.353553385 : f32
    %66 = vector.broadcast %cst_45 : f32 to vector<8x8xf32>
    %67 = arith.mulf %65, %66 : vector<8x8xf32>
    %cst_46 = arith.constant dense<0xFF800000> : vector<8xf32>
    %68 = vector.multi_reduction <maximumf>, %67, %cst_46 [1] : vector<8x8xf32> to vector<8xf32>
    %69 = vector.shape_cast %68 : vector<8xf32> to vector<8x1xf32>
    %70 = vector.broadcast %69 : vector<8x1xf32> to vector<8x8xf32>
    %71 = arith.subf %67, %70 : vector<8x8xf32>
    %72 = math.exp %71 : vector<8x8xf32>
    %cst_47 = arith.constant dense<0.000000e+00> : vector<8xf32>
    %73 = vector.multi_reduction <add>, %72, %cst_47 [1] : vector<8x8xf32> to vector<8xf32>
    %74 = vector.shape_cast %73 : vector<8xf32> to vector<8x1xf32>
    %75 = tpu.reciprocal %74 {approx = true} : vector<8x1xf32> -> vector<8x1xf32>
    %76 = vector.broadcast %75 : vector<8x1xf32> to vector<8x8xf32>
    %77 = arith.mulf %72, %76 : vector<8x8xf32>
    %78 = arith.truncf %77 : vector<8x8xf32> to vector<8x8xbf16>
    %cst_48 = arith.constant dense<0.000000e+00> : vector<8x32xf32>
    %79 = tpu.matmul %78, %64, %cst_48 {dimension_numbers = #tpu.dot_dimension_numbers<[1], [0], [0], [1], [0, 0, 1, 1], [], []>} : vector<8x8xbf16>, vector<8x32xbf16>, vector<8x32xf32> -> vector<8x32xf32>
    %c0_49 = arith.constant 0 : index
    %c0_50 = arith.constant 0 : index
    %80 = vector.load %arg23[%c0_49, %c0_50] : memref<8x128xf32, #tpu.memory_space<vmem>>, vector<8x128xf32>
    %81 = arith.truncf %79 : vector<8x32xf32> to vector<8x32xbf16>
    %c64_51 = arith.constant 64 : index
    %c0_52 = arith.constant 0 : index
    %82 = vector.load %arg10[%c64_51, %c0_52] : memref<128x128xbf16, #tpu.memory_space<vmem>>, vector<32x128xbf16>
    %cst_53 = arith.constant dense<0.000000e+00> : vector<8x128xf32>
    %83 = tpu.matmul %81, %82, %cst_53 {dimension_numbers = #tpu.dot_dimension_numbers<[1], [0], [0], [1], [0, 0, 1, 1], [], []>} : vector<8x32xbf16>, vector<32x128xbf16>, vector<8x128xf32> -> vector<8x128xf32>
    %84 = arith.addf %80, %83 : vector<8x128xf32>
    %c0_54 = arith.constant 0 : index
    %c0_55 = arith.constant 0 : index
    %85 = vector.load %arg23[%c0_54, %c0_55] : memref<8x128xf32, #tpu.memory_space<vmem>>, vector<8x128xf32>
    tpu.vector_store %arg23[%c0_54, %c0_55], %84 {strides = array<i32>} : memref<8x128xf32, #tpu.memory_space<vmem>>, vector<8x128xf32>,
    %86 = vector.extract_strided_slice %11 {offsets = [0, 96], sizes = [8, 32], strides = [1, 1]} : vector<8x128xbf16> to vector<8x32xbf16>
    %c0_56 = arith.constant 0 : index
    %c96 = arith.constant 96 : index
    %87 = vector.load %arg21[%c0_56, %c96] : memref<8x128xbf16, #tpu.memory_space<vmem>>, vector<8x32xbf16>
    %c0_57 = arith.constant 0 : index
    %c96_58 = arith.constant 96 : index
    %88 = vector.load %arg22[%c0_57, %c96_58] : memref<8x128xbf16, #tpu.memory_space<vmem>>, vector<8x32xbf16>
    %cst_59 = arith.constant dense<0.000000e+00> : vector<8x8xf32>
    %89 = tpu.matmul %86, %87, %cst_59 {dimension_numbers = #tpu.dot_dimension_numbers<[1], [1], [0], [0], [0, 0, 1, 0], [], []>} : vector<8x32xbf16>, vector<8x32xbf16>, vector<8x8xf32> -> vector<8x8xf32>
    %cst_60 = arith.constant 0.353553385 : f32
    %90 = vector.broadcast %cst_60 : f32 to vector<8x8xf32>
    %91 = arith.mulf %89, %90 : vector<8x8xf32>
    %cst_61 = arith.constant dense<0xFF800000> : vector<8xf32>
    %92 = vector.multi_reduction <maximumf>, %91, %cst_61 [1] : vector<8x8xf32> to vector<8xf32>
    %93 = vector.shape_cast %92 : vector<8xf32> to vector<8x1xf32>
    %94 = vector.broadcast %93 : vector<8x1xf32> to vector<8x8xf32>
    %95 = arith.subf %91, %94 : vector<8x8xf32>
    %96 = math.exp %95 : vector<8x8xf32>
    %cst_62 = arith.constant dense<0.000000e+00> : vector<8xf32>
    %97 = vector.multi_reduction <add>, %96, %cst_62 [1] : vector<8x8xf32> to vector<8xf32>
    %98 = vector.shape_cast %97 : vector<8xf32> to vector<8x1xf32>
    %99 = tpu.reciprocal %98 {approx = true} : vector<8x1xf32> -> vector<8x1xf32>
    %100 = vector.broadcast %99 : vector<8x1xf32> to vector<8x8xf32>
    %101 = arith.mulf %96, %100 : vector<8x8xf32>
    %102 = arith.truncf %101 : vector<8x8xf32> to vector<8x8xbf16>
    %cst_63 = arith.constant dense<0.000000e+00> : vector<8x32xf32>
    %103 = tpu.matmul %102, %88, %cst_63 {dimension_numbers = #tpu.dot_dimension_numbers<[1], [0], [0], [1], [0, 0, 1, 1], [], []>} : vector<8x8xbf16>, vector<8x32xbf16>, vector<8x32xf32> -> vector<8x32xf32>
    %c0_64 = arith.constant 0 : index
    %c0_65 = arith.constant 0 : index
    %104 = vector.load %arg23[%c0_64, %c0_65] : memref<8x128xf32, #tpu.memory_space<vmem>>, vector<8x128xf32>
    %105 = arith.truncf %103 : vector<8x32xf32> to vector<8x32xbf16>
    %c96_66 = arith.constant 96 : index
    %c0_67 = arith.constant 0 : index
    %106 = vector.load %arg10[%c96_66, %c0_67] : memref<128x128xbf16, #tpu.memory_space<vmem>>, vector<32x128xbf16>
    %cst_68 = arith.constant dense<0.000000e+00> : vector<8x128xf32>
    %107 = tpu.matmul %105, %106, %cst_68 {dimension_numbers = #tpu.dot_dimension_numbers<[1], [0], [0], [1], [0, 0, 1, 1], [], []>} : vector<8x32xbf16>, vector<32x128xbf16>, vector<8x128xf32> -> vector<8x128xf32>
    %108 = arith.addf %104, %107 : vector<8x128xf32>
    %c0_69 = arith.constant 0 : index
    %c0_70 = arith.constant 0 : index
    %109 = vector.load %arg23[%c0_69, %c0_70] : memref<8x128xf32, #tpu.memory_space<vmem>>, vector<8x128xf32>
    tpu.vector_store %arg23[%c0_69, %c0_70], %108 {strides = array<i32>} : memref<8x128xf32, #tpu.memory_space<vmem>>, vector<8x128xf32>,
    %c0_71 = arith.constant 0 : index
    %c0_72 = arith.constant 0 : index
    %110 = vector.load %arg23[%c0_71, %c0_72] : memref<8x128xf32, #tpu.memory_space<vmem>>, vector<8x128xf32>
    %c0_73 = arith.constant 0 : index
    %c0_74 = arith.constant 0 : index
    %111 = vector.load %arg11[%c0_73, %c0_74] : memref<1x128xf32, #tpu.memory_space<vmem>>, vector<1x128xf32>
    %112 = vector.broadcast %111 : vector<1x128xf32> to vector<8x128xf32>
    %113 = arith.addf %110, %112 : vector<8x128xf32>
    %114 = arith.addf %4, %113 : vector<8x128xf32>
    %c0_75 = arith.constant 0 : index
    %c0_76 = arith.constant 0 : index
    %115 = vector.load %arg16[%c0_75, %c0_76] : memref<1x128xf32, #tpu.memory_space<vmem>>, vector<1x128xf32>
    %c0_77 = arith.constant 0 : index
    %c0_78 = arith.constant 0 : index
    %116 = vector.load %arg17[%c0_77, %c0_78] : memref<1x128xf32, #tpu.memory_space<vmem>>, vector<1x128xf32>
    %cst_79 = arith.constant dense<0.000000e+00> : vector<8xf32>
    %117 = vector.multi_reduction <add>, %114, %cst_79 [1] : vector<8x128xf32> to vector<8xf32>
    %118 = vector.shape_cast %117 : vector<8xf32> to vector<8x1xf32>
    %119 = arith.mulf %114, %114 : vector<8x128xf32>
    %cst_80 = arith.constant dense<0.000000e+00> : vector<8xf32>
    %120 = vector.multi_reduction <add>, %119, %cst_80 [1] : vector<8x128xf32> to vector<8xf32>
    %121 = vector.shape_cast %120 : vector<8xf32> to vector<8x1xf32>
    %cst_81 = arith.constant 3.125000e-02 : f32
    %122 = vector.broadcast %cst_81 : f32 to vector<8x1xf32>
    %123 = arith.mulf %118, %122 : vector<8x1xf32>
    %cst_82 = arith.constant 3.125000e-02 : f32
    %124 = vector.broadcast %cst_82 : f32 to vector<8x1xf32>
    %125 = arith.mulf %121, %124 : vector<8x1xf32>
    %126 = arith.mulf %123, %123 : vector<8x1xf32>
    %127 = arith.subf %125, %126 : vector<8x1xf32>
    %128 = vector.broadcast %123 : vector<8x1xf32> to vector<8x128xf32>
    %129 = arith.subf %114, %128 : vector<8x128xf32>
    %cst_83 = arith.constant 9.99999974E-6 : f32
    %130 = vector.broadcast %cst_83 : f32 to vector<8x1xf32>
    %131 = arith.addf %127, %130 : vector<8x1xf32>
    %132 = math.rsqrt %131 : vector<8x1xf32>
    %133 = vector.broadcast %132 : vector<8x1xf32> to vector<8x128xf32>
    %134 = arith.mulf %129, %133 : vector<8x128xf32>
    %135 = vector.broadcast %115 : vector<1x128xf32> to vector<8x128xf32>
    %136 = arith.mulf %134, %135 : vector<8x128xf32>
    %137 = vector.broadcast %116 : vector<1x128xf32> to vector<8x128xf32>
    %138 = arith.addf %136, %137 : vector<8x128xf32>
    %139 = arith.truncf %138 : vector<8x128xf32> to vector<8x128xbf16>
    %cst_84 = arith.constant 0.000000e+00 : f32
    %140 = vector.broadcast %cst_84 : f32 to vector<8x128xf32>
    %c0_85 = arith.constant 0 : index
    %c0_86 = arith.constant 0 : index
    %141 = vector.load %arg23[%c0_85, %c0_86] : memref<8x128xf32, #tpu.memory_space<vmem>>, vector<8x128xf32>
    tpu.vector_store %arg23[%c0_85, %c0_86], %140 {strides = array<i32>} : memref<8x128xf32, #tpu.memory_space<vmem>>, vector<8x128xf32>,
    %c0_87 = arith.constant 0 : index
    %c0_88 = arith.constant 0 : index
    %142 = vector.load %arg12[%c0_87, %c0_88] : memref<128x128xbf16, #tpu.memory_space<vmem>>, vector<128x128xbf16>
    %cst_89 = arith.constant dense<0.000000e+00> : vector<8x128xf32>
    %143 = tpu.matmul %139, %142, %cst_89 {dimension_numbers = #tpu.dot_dimension_numbers<[1], [0], [0], [1], [0, 0, 1, 1], [], []>} : vector<8x128xbf16>, vector<128x128xbf16>, vector<8x128xf32> -> vector<8x128xf32>
    %c0_90 = arith.constant 0 : index
    %c0_91 = arith.constant 0 : index
    %144 = vector.load %arg13[%c0_90, %c0_91] : memref<1x128xf32, #tpu.memory_space<vmem>>, vector<1x128xf32>
    %145 = vector.broadcast %144 : vector<1x128xf32> to vector<8x128xf32>
    %146 = arith.addf %143, %145 : vector<8x128xf32>
    %cst_92 = arith.constant 0.000000e+00 : f32
    %147 = vector.broadcast %cst_92 : f32 to vector<8x128xf32>
    %148 = arith.maximumf %146, %147 : vector<8x128xf32>
    %149 = arith.truncf %148 : vector<8x128xf32> to vector<8x128xbf16>
    %c0_93 = arith.constant 0 : index
    %c0_94 = arith.constant 0 : index
    %150 = vector.load %arg23[%c0_93, %c0_94] : memref<8x128xf32, #tpu.memory_space<vmem>>, vector<8x128xf32>
    %c0_95 = arith.constant 0 : index
    %c0_96 = arith.constant 0 : index
    %151 = vector.load %arg14[%c0_95, %c0_96] : memref<128x128xbf16, #tpu.memory_space<vmem>>, vector<128x128xbf16>
    %cst_97 = arith.constant dense<0.000000e+00> : vector<8x128xf32>
    %152 = tpu.matmul %149, %151, %cst_97 {dimension_numbers = #tpu.dot_dimension_numbers<[1], [0], [0], [1], [0, 0, 1, 1], [], []>} : vector<8x128xbf16>, vector<128x128xbf16>, vector<8x128xf32> -> vector<8x128xf32>
    %153 = arith.addf %150, %152 : vector<8x128xf32>
    %c0_98 = arith.constant 0 : index
    %c0_99 = arith.constant 0 : index
    %154 = vector.load %arg23[%c0_98, %c0_99] : memref<8x128xf32, #tpu.memory_space<vmem>>, vector<8x128xf32>
    tpu.vector_store %arg23[%c0_98, %c0_99], %153 {strides = array<i32>} : memref<8x128xf32, #tpu.memory_space<vmem>>, vector<8x128xf32>,
    %c0_100 = arith.constant 0 : index
    %c0_101 = arith.constant 0 : index
    %155 = vector.load %arg23[%c0_100, %c0_101] : memref<8x128xf32, #tpu.memory_space<vmem>>, vector<8x128xf32>
    %c0_102 = arith.constant 0 : index
    %c0_103 = arith.constant 0 : index
    %156 = vector.load %arg15[%c0_102, %c0_103] : memref<1x128xf32, #tpu.memory_space<vmem>>, vector<1x128xf32>
    %157 = vector.broadcast %156 : vector<1x128xf32> to vector<8x128xf32>
    %158 = arith.addf %155, %157 : vector<8x128xf32>
    %159 = arith.addf %138, %158 : vector<8x128xf32>
    %c0_104 = arith.constant 0 : index
    %c0_105 = arith.constant 0 : index
    %160 = vector.load %arg18[%c0_104, %c0_105] : memref<1x128xf32, #tpu.memory_space<vmem>>, vector<1x128xf32>
    %c0_106 = arith.constant 0 : index
    %c0_107 = arith.constant 0 : index
    %161 = vector.load %arg19[%c0_106, %c0_107] : memref<1x128xf32, #tpu.memory_space<vmem>>, vector<1x128xf32>
    %cst_108 = arith.constant dense<0.000000e+00> : vector<8xf32>
    %162 = vector.multi_reduction <add>, %159, %cst_108 [1] : vector<8x128xf32> to vector<8xf32>
    %163 = vector.shape_cast %162 : vector<8xf32> to vector<8x1xf32>
    %164 = arith.mulf %159, %159 : vector<8x128xf32>
    %cst_109 = arith.constant dense<0.000000e+00> : vector<8xf32>
    %165 = vector.multi_reduction <add>, %164, %cst_109 [1] : vector<8x128xf32> to vector<8xf32>
    %166 = vector.shape_cast %165 : vector<8xf32> to vector<8x1xf32>
    %cst_110 = arith.constant 3.125000e-02 : f32
    %167 = vector.broadcast %cst_110 : f32 to vector<8x1xf32>
    %168 = arith.mulf %163, %167 : vector<8x1xf32>
    %cst_111 = arith.constant 3.125000e-02 : f32
    %169 = vector.broadcast %cst_111 : f32 to vector<8x1xf32>
    %170 = arith.mulf %166, %169 : vector<8x1xf32>
    %171 = arith.mulf %168, %168 : vector<8x1xf32>
    %172 = arith.subf %170, %171 : vector<8x1xf32>
    %173 = vector.broadcast %168 : vector<8x1xf32> to vector<8x128xf32>
    %174 = arith.subf %159, %173 : vector<8x128xf32>
    %cst_112 = arith.constant 9.99999974E-6 : f32
    %175 = vector.broadcast %cst_112 : f32 to vector<8x1xf32>
    %176 = arith.addf %172, %175 : vector<8x1xf32>
    %177 = math.rsqrt %176 : vector<8x1xf32>
    %178 = vector.broadcast %177 : vector<8x1xf32> to vector<8x128xf32>
    %179 = arith.mulf %174, %178 : vector<8x128xf32>
    %180 = vector.broadcast %160 : vector<1x128xf32> to vector<8x128xf32>
    %181 = arith.mulf %179, %180 : vector<8x128xf32>
    %182 = vector.broadcast %161 : vector<1x128xf32> to vector<8x128xf32>
    %183 = arith.addf %181, %182 : vector<8x128xf32>
    %c0_113 = arith.constant 0 : index
    %c0_114 = arith.constant 0 : index
    %c0_115 = arith.constant 0 : index
    %184 = vector.load %arg20[%c0_113, %c0_114, %c0_115] : memref<1x8x128xf32, #tpu.memory_space<vmem>>, vector<1x8x128xf32>
    %185 = vector.shape_cast %184 : vector<1x8x128xf32> to vector<8x128xf32>
    %186 = vector.shape_cast %183 : vector<8x128xf32> to vector<1x8x128xf32>
    tpu.vector_store %arg20[%c0_113, %c0_114, %c0_115], %186 {strides = array<i32>} : memref<1x8x128xf32, #tpu.memory_space<vmem>>, vector<1x8x128xf32>,
    return
  }
  func.func @transform_0(%arg0: i32, %arg1: i32) -> (i32, i32, i32) {
    %c0_i32 = arith.constant 0 : i32
    %c0_i32_0 = arith.constant 0 : i32
    %c0_i32_1 = arith.constant 0 : i32
    return %arg0, %c0_i32, %c0_i32_0 : i32, i32, i32
  }
  func.func @transform_1(%arg0: i32, %arg1: i32) -> (i32, i32, i32) {
    %c0_i32 = arith.constant 0 : i32
    %c0_i32_0 = arith.constant 0 : i32
    return %arg0, %arg1, %c0_i32 : i32, i32, i32
  }
  func.func @transform_2(%arg0: i32, %arg1: i32) -> (i32, i32) {
    %c0_i32 = arith.constant 0 : i32
    %c0_i32_0 = arith.constant 0 : i32
    %c0_i32_1 = arith.constant 0 : i32
    return %c0_i32, %c0_i32_0 : i32, i32
  }
  func.func @transform_3(%arg0: i32, %arg1: i32) -> (i32, i32) {
    %c0_i32 = arith.constant 0 : i32
    %c0_i32_0 = arith.constant 0 : i32
    %c0_i32_1 = arith.constant 0 : i32
    return %c0_i32, %c0_i32_0 : i32, i32
  }
  func.func @transform_4(%arg0: i32, %arg1: i32) -> (i32, i32) {
    %c0_i32 = arith.constant 0 : i32
    %c0_i32_0 = arith.constant 0 : i32
    %c0_i32_1 = arith.constant 0 : i32
    return %c0_i32, %c0_i32_0 : i32, i32
  }
  func.func @transform_5(%arg0: i32, %arg1: i32) -> (i32, i32) {
    %c0_i32 = arith.constant 0 : i32
    %c0_i32_0 = arith.constant 0 : i32
    %c0_i32_1 = arith.constant 0 : i32
    return %c0_i32, %c0_i32_0 : i32, i32
  }
  func.func @transform_6(%arg0: i32, %arg1: i32) -> (i32, i32) {
    %c0_i32 = arith.constant 0 : i32
    %c0_i32_0 = arith.constant 0 : i32
    %c0_i32_1 = arith.constant 0 : i32
    return %c0_i32, %c0_i32_0 : i32, i32
  }
  func.func @transform_7(%arg0: i32, %arg1: i32) -> (i32, i32) {
    %c0_i32 = arith.constant 0 : i32
    %c0_i32_0 = arith.constant 0 : i32
    %c0_i32_1 = arith.constant 0 : i32
    return %c0_i32, %c0_i32_0 : i32, i32
  }
  func.func @transform_8(%arg0: i32, %arg1: i32) -> (i32, i32) {
    %c0_i32 = arith.constant 0 : i32
    %c0_i32_0 = arith.constant 0 : i32
    %c0_i32_1 = arith.constant 0 : i32
    return %c0_i32, %c0_i32_0 : i32, i32
  }
  func.func @transform_9(%arg0: i32, %arg1: i32) -> (i32, i32) {
    %c0_i32 = arith.constant 0 : i32
    %c0_i32_0 = arith.constant 0 : i32
    %c0_i32_1 = arith.constant 0 : i32
    return %c0_i32, %c0_i32_0 : i32, i32
  }
  func.func @transform_10(%arg0: i32, %arg1: i32) -> (i32, i32) {
    %c0_i32 = arith.constant 0 : i32
    %c0_i32_0 = arith.constant 0 : i32
    %c0_i32_1 = arith.constant 0 : i32
    return %c0_i32, %c0_i32_0 : i32, i32
  }
  func.func @transform_11(%arg0: i32, %arg1: i32) -> (i32, i32) {
    %c0_i32 = arith.constant 0 : i32
    %c0_i32_0 = arith.constant 0 : i32
    %c0_i32_1 = arith.constant 0 : i32
    return %c0_i32, %c0_i32_0 : i32, i32
  }
  func.func @transform_12(%arg0: i32, %arg1: i32) -> (i32, i32) {
    %c0_i32 = arith.constant 0 : i32
    %c0_i32_0 = arith.constant 0 : i32
    %c0_i32_1 = arith.constant 0 : i32
    return %c0_i32, %c0_i32_0 : i32, i32
  }
  func.func @transform_13(%arg0: i32, %arg1: i32) -> (i32, i32) {
    %c0_i32 = arith.constant 0 : i32
    %c0_i32_0 = arith.constant 0 : i32
    %c0_i32_1 = arith.constant 0 : i32
    return %c0_i32, %c0_i32_0 : i32, i32
  }
  func.func @transform_14(%arg0: i32, %arg1: i32) -> (i32, i32) {
    %c0_i32 = arith.constant 0 : i32
    %c0_i32_0 = arith.constant 0 : i32
    %c0_i32_1 = arith.constant 0 : i32
    return %c0_i32, %c0_i32_0 : i32, i32
  }
  func.func @transform_15(%arg0: i32, %arg1: i32) -> (i32, i32) {
    %c0_i32 = arith.constant 0 : i32
    %c0_i32_0 = arith.constant 0 : i32
    %c0_i32_1 = arith.constant 0 : i32
    return %c0_i32, %c0_i32_0 : i32, i32
  }
  func.func @transform_16(%arg0: i32, %arg1: i32) -> (i32, i32) {
    %c0_i32 = arith.constant 0 : i32
    %c0_i32_0 = arith.constant 0 : i32
    %c0_i32_1 = arith.constant 0 : i32
    return %c0_i32, %c0_i32_0 : i32, i32
  }
  func.func @transform_17(%arg0: i32, %arg1: i32) -> (i32, i32) {
    %c0_i32 = arith.constant 0 : i32
    %c0_i32_0 = arith.constant 0 : i32
    %c0_i32_1 = arith.constant 0 : i32
    return %c0_i32, %c0_i32_0 : i32, i32
  }
  func.func @transform_18(%arg0: i32, %arg1: i32) -> (i32, i32, i32) {
    %c0_i32 = arith.constant 0 : i32
    %c0_i32_0 = arith.constant 0 : i32
    return %arg0, %arg1, %c0_i32 : i32, i32, i32
  }
}

</mosaic_0001>

<bundles_post_ra>
// kernel: tpu_custom_call.1
= control target key start
LH: loop header
LB: loop body
LE: loop exit
PB: predicated region body
PF: predicated region fallthrough
CT: control target
= control target key end

     0   :  { %s3849_s0 = inlined_call_operand.hbm [shape: f32[2,8,128], index: 0, kind: input, shape index: {}]   ;;  %s3850_s1 = inlined_call_operand.hbm [shape: f32[2,8,128], index: 1, kind: input, shape index: {}]   ;;  %s3851_s2 = inlined_call_operand.hbm [shape: bf16[128,128], index: 2, kind: input, shape index: {}]   ;;  %s3852_s3 = inlined_call_operand.vmem [shape: f32[1,128], index: 3, kind: input, shape index: {}]   ;;  %s3853_s4 = inlined_call_operand.hbm [shape: bf16[128,128], index: 4, kind: input, shape index: {}]   ;;  %s3854_s5 = inlined_call_operand.vmem [shape: f32[1,128], index: 5, kind: input, shape index: {}]   ;;  %s3855_s6 = inlined_call_operand.hbm [shape: bf16[128,128], index: 6, kind: input, shape index: {}]   ;;  %s3856_s7 = inlined_call_operand.vmem [shape: f32[1,128], index: 7, kind: input, shape index: {}]   ;;  %s3857_s8 = inlined_call_operand.hbm [shape: bf16[128,128], index: 8, kind: input, shape index: {}]   ;;  %s3858_s9 = inlined_call_operand.vmem [shape: f32[1,128], index: 9, kind: input, shape index: {}]   ;;  %s3859_s10 = inlined_call_operand.hbm [shape: bf16[128,128], index: 10, kind: input, shape index: {}]   ;;  %s3860_s11 = inlined_call_operand.vmem [shape: f32[1,128], index: 11, kind: input, shape index: {}]   ;;  %s3861_s12 = inlined_call_operand.hbm [shape: bf16[128,128], index: 12, kind: input, shape index: {}]   ;;  %s3862_s13 = inlined_call_operand.vmem [shape: f32[1,128], index: 13, kind: input, shape index: {}]   ;;  %s3863_s14 = inlined_call_operand.vmem [shape: f32[1,128], index: 14, kind: input, shape index: {}]   ;;  %s3864_s15 = inlined_call_operand.vmem [shape: f32[1,128], index: 15, kind: input, shape index: {}]   ;;  %s3865_s16 = inlined_call_operand.vmem [shape: f32[1,128], index: 16, kind: input, shape index: {}]   ;;  %s3866_s17 = inlined_call_operand.vmem [shape: f32[1,128], index: 17, kind: input, shape index: {}]   ;;  %s3867_s18 = inlined_call_operand.hbm [shape: f32[2,8,128], index: 18, kind: output, shape index: {}]  }
   0x1   :  { %3878 = sst [smem:[#allocation29_spill]] %s3849_s0 }
   0x2   :  { %3879 = sst [smem:[#allocation30_spill]] %s3850_s1 }
   0x3   :  { %3880 = sst [smem:[#allocation31_spill]] %s3851_s2 }
   0x4   :  { %3881 = sst [smem:[#allocation32_spill]] %s3853_s4 }
   0x5   :  { %3882 = sst [smem:[#allocation33_spill]] %s3855_s6 }
   0x6   :  { %3883 = sst [smem:[#allocation34_spill]] %s3856_s7 }
   0x7   :  { %3884 = sst [smem:[#allocation35_spill]] %s3857_s8 }
   0x8   :  { %3885 = sst [smem:[#allocation36_spill]] %s3858_s9 }
   0x9   :  { %3886 = sst [smem:[#allocation37_spill]] %s3859_s10 }
   0xa   :  { %3887 = sst [smem:[#allocation38_spill]] %s3860_s11 }
   0xb   :  { %3888 = sst [smem:[#allocation39_spill]] %s3861_s12 }
   0xc   :  { %3889 = sst [smem:[#allocation40_spill]] %s3862_s13 }
   0xd   :  { %3890 = sst [smem:[#allocation41_spill]] %s3863_s14 }
   0xe   :  { %3891 = sst [smem:[#allocation42_spill]] %s3864_s15 }
   0xf   :  { %3892 = sst [smem:[#allocation43_spill]] %s3865_s16 }
  0x10   :  { %3893 = sst [smem:[#allocation44_spill]] %s3866_s17 }
  0x11   :  { %3894 = sst [smem:[#allocation45_spill]] %s3867_s18 }
  0x12   :  { %23 = vsyncpa [#allocation6], 0 }
  0x13   :  { %25 = vsyncpa [#allocation6 + $0x1], 0 }
  0x14   :  { %26 = vsyncpa [#allocation9], 0 }
  0x15   :  { %28 = vsyncpa [#allocation9 + $0x1], 0 }
  0x16   :  { %29 = vsyncpa [#allocation12], 0 }
  0x17   :  { %30 = vsyncpa [#allocation15], 0 }
  0x18   :  { %31 = vsyncpa [#allocation18], 0 }
  0x19   :  { %32 = vsyncpa [#allocation7], 0 }
  0x1a   :  { %34 = vsyncpa [#allocation7 + $0x1], 0  ;;  %s3285_s27 = smov 0   ;;  %s3287_s28 = smov 0  }
  0x1b   :  { %s3289_s29 = smov 0   ;;  %s3291_s30 = smov 0  }
  0x1c   :  { %s3293_s0 = smov 0   ;;  %s3295_s19 = smov 0  }
  0x1d LB: > { %3895 = sst [smem:[#allocation27_spill]] %s3164_s30  ;;  %s3316_s1 = sadd.s32 4294967295, %s3172_s19   ;;  %s3172_s19 = sphi %s3295_s19, %s40_s19   ;;  %s3168_s0 = sphi %s3293_s0, %s3943_s0   ;;  %s3164_s30 = sphi %s3291_s30, %s3942_s30   ;;  %s3160_s29 = sphi %s3289_s29, %s3941_s29   ;;  %s3156_s28 = sphi %s3287_s28, %s3940_s28   ;;  %s3152_s27 = sphi %s3285_s27, %s3939_s27  }
  0x1e   : > { %p2278_p0 = scmp.ge.s32.totalorder %s3172_s19, 1  ;;  %p3872_p1 = scmp.eq.s32.totalorder %s3316_s1, 0 }
  0x1f   : > { %p475_p2 = scmp.lt.s32.totalorder %s3172_s19, 3  ;;  %s3174_s21 = smov [#allocation10]  }
  0x20   : > { %s487_s22 = sshll.u32 %s3174_s21, 4  ;;  %s3175_s23 = smov [#allocation11]   ;;  %s3325_s22 = int_to_ptr.vmem [resolvable:$true] %s487_s22 }
  0x21   : > { %p3321_p3 = pnand %p2278_p0, %p475_p2  ;;  %s503_s24 = sshll.u32 %s3175_s23, 4  ;;  %s3336_s24 = int_to_ptr.vmem [resolvable:$true] %s503_s24 }
  0x22   : > { %s3176_s25 = smov [#allocation14]   ;;  %s3898_s17 = sld [smem:[#allocation31_spill]] }
  0x23   : > { %s3896_s20 = scalar_select %p3321_p3, 1, 0 }
  0x24   : > { %p2663_p4 = pneg %p3321_p3  ;;  %s3338_s26 = sshll.u32 %s3176_s25, 4  ;;  %s536_s26 = int_to_ptr.vmem [resolvable:$true] %s3338_s26 }
  0x26   : > { %p3332_p6 = pnand %p2663_p4, %p3872_p1 }
  0x28   : > { %s2842_s16 = scalar_lea.hbm %s3898_s17, 1024  ;;  %p3348_p8 = pneg %p3332_p6 }
  0x29   : > { %p2843_p7 = scmp.ne.s32.totalorder %s3898_s17, %s2842_s16  ;;  %p2849_p11 = scmp.lt.u32.totalorder %s2842_s16, %s3898_s17 }
  0x2b   : > { %p2845_p9 = pnand %p3348_p8, %p2843_p7 }
  0x2d   : > { %p2846_p10 = pneg %p2845_p9 }
  0x2f   : > { %p2851_p12 = pnand %p2849_p11, %p2846_p10 }
  0x31   : > { %2854 = shalt.err (!%p2851_p12)
}
  0x32   : > { %s2855_s13 = scalar_lea.vmem %s3325_s22, 1024  ;;  %p2863_p4 = scmp.lt.s32.totalorder %s3325_s22, %s3325_s22 }
  0x33   : > { %p2856_p13 = scmp.ne.s32.totalorder %s3325_s22, %s2855_s13  ;;  %p2864_p5 = scmp.lt.s32.totalorder %s2855_s13, %s2855_s13 }
  0x35   : > { %p2858_p0 = pnand %p2856_p13, %p3348_p8  ;;  %p2865_p7 = por %p2864_p5, %p2863_p4 }
  0x37   : > { %p2859_p2 = pneg %p2858_p0 }
  0x39   : > { %p2866_p9 = pnand %p2865_p7, %p2859_p2 }
  0x3b   : > { %2869 = shalt.err (!%p2866_p9)
}
  0x3c   : > { %s3177_s18 = smov 64   ;;  %s3178_s16 = smov 4  }
  0x3d   : > { %2666 = dma.hbm_to_vmem [thread:$0]  (!%p3332_p6), %s3898_s17, 1024, %s3325_s22, [#allocation9], %s3177_s18, %s3177_s18, %s3178_s16  }
  0x3e   : > { %s3900_s4 = sld [smem:[#allocation32_spill]] }
  0x44   : > { %s2870_s13 = scalar_lea.hbm %s3900_s4, 1024 }
  0x45   : > { %p2871_p5 = scmp.ne.s32.totalorder %s3900_s4, %s2870_s13  ;;  %p2877_p12 = scmp.lt.u32.totalorder %s2870_s13, %s3900_s4 }
  0x47   : > { %p2873_p10 = pnand %p2871_p5, %p3348_p8 }
  0x49   : > { %p2874_p11 = pneg %p2873_p10 }
  0x4b   : > { %p2879_p13 = pnand %p2877_p12, %p2874_p11 }
  0x4d   : > { %2882 = shalt.err (!%p2879_p13)
}
  0x4e   : > { %s2883_s22 = scalar_lea.vmem %s3336_s24, 1024  ;;  %p2891_p7 = scmp.lt.s32.totalorder %s3336_s24, %s3336_s24 }
  0x4f   : > { %p2884_p0 = scmp.ne.s32.totalorder %s3336_s24, %s2883_s22  ;;  %p2892_p9 = scmp.lt.s32.totalorder %s2883_s22, %s2883_s22 }
  0x51   : > { %p2886_p2 = pnand %p2884_p0, %p3348_p8  ;;  %p2893_p5 = por %p2892_p9, %p2891_p7 }
  0x53   : > { %p2887_p4 = pneg %p2886_p2 }
  0x55   : > { %p2894_p10 = pnand %p2893_p5, %p2887_p4 }
  0x57   : > { %2897 = shalt.err (!%p2894_p10)
}
  0x58   : > { %2669 = dma.hbm_to_vmem [thread:$0]  (!%p3332_p6), %s3900_s4, 1024, %s3336_s24, [#allocation12], %s3177_s18, %s3177_s18, %s3178_s16  }
  0x59   : > { %s3901_s8 = sld [smem:[#allocation35_spill]] }
  0x5f   : > { %s2898_s30 = scalar_lea.hbm %s3901_s8, 1024 }
  0x60   : > { %p2899_p11 = scmp.ne.s32.totalorder %s3901_s8, %s2898_s30  ;;  %p2905_p0 = scmp.lt.u32.totalorder %s2898_s30, %s3901_s8 }
  0x62   : > { %p2901_p12 = pnand %p2899_p11, %p3348_p8 }
  0x64   : > { %p2902_p13 = pneg %p2901_p12 }
  0x66   : > { %p2907_p2 = pnand %p2905_p0, %p2902_p13 }
  0x68   : > { %2910 = shalt.err (!%p2907_p2)
}
  0x69   : > { %s2911_s22 = scalar_lea.vmem %s536_s26, 1024  ;;  %p2919_p5 = scmp.lt.s32.totalorder %s536_s26, %s536_s26 }
  0x6a   : > { %p2912_p4 = scmp.ne.s32.totalorder %s536_s26, %s2911_s22  ;;  %p2920_p10 = scmp.lt.s32.totalorder %s2911_s22, %s2911_s22 }
  0x6c   : > { %p2914_p7 = pnand %p2912_p4, %p3348_p8  ;;  %p2921_p1 = por %p2920_p10, %p2919_p5 }
  0x6e   : > { %p2915_p9 = pneg %p2914_p7 }
  0x70   : > { %p2922_p3 = pnand %p2921_p1, %p2915_p9 }
  0x72   : > { %2925 = shalt.err (!%p2922_p3)
}
  0x73   : > { %2675 = dma.hbm_to_vmem [thread:$0]  (!%p3332_p6), %s3901_s8, 1024, %s536_s26, [#allocation15], %s3177_s18, %s3177_s18, %s3178_s16  }
  0x74   : > { %s3179_s9 = smov [#allocation13]   ;;  %s3180_s15 = smov [#allocation16]  }
  0x75   : > { %s519_s14 = sshll.u32 %s3179_s9, 4  ;;  %s551_s30 = sshll.u32 %s3180_s15, 4  ;;  %s520_s14 = int_to_ptr.vmem [resolvable:$true] %s519_s14  ;;  %s552_s30 = int_to_ptr.vmem [resolvable:$true] %s551_s30 }
  0x76   : > { %s3902_s6 = sld [smem:[#allocation33_spill]] }
  0x7c   : > { %s2926_s25 = scalar_lea.hbm %s3902_s6, 1024 }
  0x7d   : > { %p2927_p1 = scmp.ne.s32.totalorder %s3902_s6, %s2926_s25  ;;  %p2933_p12 = scmp.lt.u32.totalorder %s2926_s25, %s3902_s6 }
  0x7f   : > { %p2929_p3 = pnand %p2927_p1, %p3348_p8 }
  0x81   : > { %p2930_p11 = pneg %p2929_p3 }
  0x83   : > { %p2935_p13 = pnand %p2933_p12, %p2930_p11 }
  0x85   : > { %2938 = shalt.err (!%p2935_p13)
}
  0x86   : > { %s2939_s26 = scalar_lea.vmem %s520_s14, 1024  ;;  %p2947_p7 = scmp.lt.s32.totalorder %s520_s14, %s520_s14 }
  0x87   : > { %p2940_p0 = scmp.ne.s32.totalorder %s520_s14, %s2939_s26  ;;  %p2948_p9 = scmp.lt.s32.totalorder %s2939_s26, %s2939_s26 }
  0x89   : > { %p2942_p2 = pnand %p2940_p0, %p3348_p8  ;;  %p2949_p5 = por %p2948_p9, %p2947_p7 }
  0x8b   : > { %p2943_p4 = pneg %p2942_p2 }
  0x8d   : > { %p2950_p10 = pnand %p2949_p5, %p2943_p4 }
  0x8f   : > { %2953 = shalt.err (!%p2950_p10)
}
  0x90   : > { %2672 = dma.hbm_to_vmem [thread:$0]  (!%p3332_p6), %s3902_s6, 1024, %s520_s14, [#allocation12], %s3177_s18, %s3177_s18, %s3178_s16  }
  0x91   : > { %s3903_s10 = sld [smem:[#allocation37_spill]] }
  0x97   : > { %s2954_s21 = scalar_lea.hbm %s3903_s10, 1024 }
  0x98   : > { %p2955_p1 = scmp.ne.s32.totalorder %s3903_s10, %s2954_s21  ;;  %p2961_p12 = scmp.lt.u32.totalorder %s2954_s21, %s3903_s10 }
  0x9a   : > { %p2957_p3 = pnand %p2955_p1, %p3348_p8 }
  0x9c   : > { %p2958_p11 = pneg %p2957_p3 }
  0x9e   : > { %p2963_p13 = pnand %p2961_p12, %p2958_p11 }
  0xa0   : > { %2966 = shalt.err (!%p2963_p13)
}
  0xa1   : > { %s2967_s24 = scalar_lea.vmem %s552_s30, 1024  ;;  %p2975_p7 = scmp.lt.s32.totalorder %s552_s30, %s552_s30 }
  0xa2   : > { %p2968_p0 = scmp.ne.s32.totalorder %s552_s30, %s2967_s24  ;;  %p2976_p9 = scmp.lt.s32.totalorder %s2967_s24, %s2967_s24 }
  0xa4   : > { %p2970_p2 = pnand %p2968_p0, %p3348_p8  ;;  %p2977_p5 = por %p2976_p9, %p2975_p7 }
  0xa6   : > { %p2971_p4 = pneg %p2970_p2 }
  0xa8   : > { %p2978_p10 = pnand %p2977_p5, %p2971_p4 }
  0xaa   : > { %2981 = shalt.err (!%p2978_p10)
}
  0xab   : > { %2678 = dma.hbm_to_vmem [thread:$0]  (!%p3332_p6), %s3903_s10, 1024, %s552_s30, [#allocation15], %s3177_s18, %s3177_s18, %s3178_s16  }
  0xac   : > { %s3181_s4 = smov [#allocation17]   ;;  %s3904_s12 = sld [smem:[#allocation39_spill]] }
  0xad   : > { %s567_s7 = sshll.u32 %s3181_s4, 4  ;;  %s568_s7 = int_to_ptr.vmem [resolvable:$true] %s567_s7 }
  0xb2   : > { %s2982_s21 = scalar_lea.hbm %s3904_s12, 1024 }
  0xb3   : > { %p2983_p1 = scmp.ne.s32.totalorder %s3904_s12, %s2982_s21  ;;  %p2989_p12 = scmp.lt.u32.totalorder %s2982_s21, %s3904_s12 }
  0xb5   : > { %p2985_p3 = pnand %p2983_p1, %p3348_p8 }
  0xb7   : > { %p2986_p11 = pneg %p2985_p3 }
  0xb9   : > { %p2991_p13 = pnand %p2989_p12, %p2986_p11 }
  0xbb   : > { %2994 = shalt.err (!%p2991_p13)
}
  0xbc   : > { %s2995_s30 = scalar_lea.vmem %s568_s7, 1024  ;;  %p3003_p7 = scmp.lt.s32.totalorder %s568_s7, %s568_s7 }
  0xbd   : > { %p2996_p0 = scmp.ne.s32.totalorder %s568_s7, %s2995_s30  ;;  %p3004_p9 = scmp.lt.s32.totalorder %s2995_s30, %s2995_s30 }
  0xbf   : > { %p2998_p2 = pnand %p2996_p0, %p3348_p8  ;;  %p3005_p5 = por %p3004_p9, %p3003_p7 }
  0xc1   : > { %p2999_p4 = pneg %p2998_p2 }
  0xc3   : > { %p3006_p10 = pnand %p3005_p5, %p2999_p4 }
  0xc5   : > { %3009 = shalt.err (!%p3006_p10)
}
  0xc6   : > { %2681 = dma.hbm_to_vmem [thread:$0]  (!%p3332_p6), %s3904_s12, 1024, %s568_s7, [#allocation18], %s3177_s18, %s3177_s18, %s3178_s16  }
  0xc7   : > { %s2277_s11 = sadd.s32 4294967294, %s3172_s19   ;;  %s52_s2 = sadd.s32 1, %s3168_s0 }
  0xc8   : > { %p54_p8 = scmp.ge.s32.totalorder %s52_s2, 2  ;;  %s59_s26 = sadd.s32 1, %s3160_s29 }
  0xc9   : > { %p66_p1 = scmp.ne.s32.totalorder %s3160_s29, %s3156_s28  ;;  %p67_p3 = scmp.eq.s32.totalorder %s3172_s19, 0 }
  0xca   : > { %s3945_s2 = smov (%p54_p8, %s52_s2), 0  ;;  %p72_p12 = scmp.ne.s32.totalorder %s3156_s28, %s3152_s27 }
  0xcb   : > { %3905 = sst [smem:[#allocation28_spill]] %s3945_s2  ;;  %p3491_p11 = por %p67_p3, %p66_p1 }
  0xcc   : > { %s56_s18 = ssub.s32 %s3168_s0, %s3945_s2  ;;  %p462_p6 = scmp.eq.s32.totalorder %s3316_s1, 1 }
  0xcd   : > { %p57_p13 = scmp.eq.s32.totalorder %s56_s18, 0  ;;  %p3907_p0 = scmp.eq.s32.totalorder %s3316_s1, 0 }
  0xce   : > { %p3506_p4 = por %p462_p6, %p66_p1  ;;  %p468_p7 = scmp.eq.s32.totalorder %s2277_s11, 1 }
  0xcf   : > { %p3502_p2 = por %p3907_p0, %p72_p12  ;;  %p2699_p5 = scmp.lt.s32.totalorder %s3172_s19, 2 }
  0xd0   : > { %s3909_s7 = scalar_select %p3506_p4, 1, 0 }
  0xd1   : > { %s3908_s16 = scalar_select %p3502_p2, 1, 0 }
  0xd2   : > { %s3511_s9 = scalar_select %p57_p13, %s3160_s29, %s59_s26  }
  0xd3   : > { %p3513_p9 = por %p468_p7, %p72_p12  ;;  %s596_s21 = sand.u32 1, %s3160_s29  }
  0xd4   : > { %s2287_s23 = sshll.u32 %s3168_s0, 7  ;;  %s3520_s25 = sshll.u32 %s596_s21, 3 }
  0xd5   : > { %s3910_s15 = scalar_select %p3513_p9, 1, 0 }
  0xd6   : > { %s3911_s30 = sld [smem:[#allocation29_spill]]  ;;  %s600_s11 = scalar_lea.vmem [#allocation5], %s3520_s25 }
  0xd7   : > { %s607_s26 = sshll.u32 %s600_s11, 4  ;;  %p3530_p10 = pnand %p2699_p5, %p3491_p11  ;;  %s3534_s26 = int_to_ptr.vmem [resolvable:$true] %s607_s26 }
  0xd8   : > { %s3914_s22 = sld [smem:[#allocation30_spill]]  ;;  %s597_s8 = scalar_lea.sflag [#allocation6], %s596_s21 }
  0xd9   : > { %p3012_p1 = pneg %p3530_p10 }
  0xdc   : > { %s3912_s24 = smov %s3911_s30  ;;  %s3525_s14 = scalar_lea.hbm %s3911_s30, %s2287_s23 }
  0xdd   : > { %s3010_s10 = scalar_lea.hbm %s3525_s14, 128  ;;  %s3015_s12 = scalar_lea.hbm %s3912_s24, 256 }
  0xde   : > { %s3539_s30 = scalar_lea.hbm %s3914_s22, %s2287_s23  ;;  %p3011_p8 = scmp.ne.s32.totalorder %s3525_s14, %s3010_s10 }
  0xdf   : > { %p3016_p12 = scmp.lt.u32.totalorder %s3525_s14, %s3912_s24  ;;  %p3017_p6 = scmp.lt.u32.totalorder %s3015_s12, %s3010_s10 }
  0xe0   : > { %p3013_p3 = pnand %p3012_p1, %p3011_p8  ;;  %p3019_p0 = scmp.lt.u32.totalorder %s3010_s10, %s3525_s14 }
  0xe1   : > { %p3018_p13 = por %p3017_p6, %p3016_p12 }
  0xe2   : > { %p3014_p11 = pneg %p3013_p3 }
  0xe3   : > { %p3020_p7 = por %p3019_p0, %p3018_p13 }
  0xe5   : > { %p3021_p5 = pnand %p3020_p7, %p3014_p11 }
  0xe7   : > { %3024 = shalt.err (!%p3021_p5)
}
  0xe8   : > { %s3025_s6 = scalar_lea.vmem %s3534_s26, 128  ;;  %s3182_s21 = smov [#allocation5]  }
  0xe9   : > { %p3026_p8 = scmp.ne.s32.totalorder %s3534_s26, %s3025_s6  ;;  %s3030_s23 = sshll.u32 %s3182_s21, 4  ;;  %s3031_s23 = int_to_ptr.vmem [resolvable:$false] %s3030_s23 }
  0xea   : > { %s3032_s17 = scalar_lea.vmem %s3031_s23, 256  ;;  %p3033_p4 = scmp.lt.s32.totalorder %s3534_s26, %s3031_s23 }
  0xeb   : > { %p3028_p3 = pnand %p3026_p8, %p3012_p1  ;;  %p3034_p12 = scmp.lt.s32.totalorder %s3032_s17, %s3025_s6 }
  0xed   : > { %p3029_p9 = pneg %p3028_p3  ;;  %p3035_p6 = por %p3034_p12, %p3033_p4 }
  0xef   : > { %p3036_p13 = pnand %p3035_p6, %p3029_p9 }
  0xf1   : > { %3039 = shalt.err (!%p3036_p13)
}
  0xf2   : > { %2685 = dma.hbm_to_vmem [thread:$0]  (!%p3530_p10), %s3525_s14, 128, %s3534_s26, %s597_s8  }
  0xf3   : > { %s614_s10 = sand.u32 1, %s3172_s19   ;;  %s618_s12 = scalar_lea.vmem [#allocation8], %s3520_s25 }
  0xf4   : > { %s626_s2 = sshll.u32 %s618_s12, 4  ;;  %s615_s13 = scalar_lea.sflag [#allocation9], %s614_s10  ;;  %s627_s2 = int_to_ptr.vmem [resolvable:$true] %s626_s2 }
  0xf5   : > { %s3040_s4 = scalar_lea.hbm %s3539_s30, 128  ;;  %s3045_s21 = scalar_lea.hbm %s3914_s22, 256 }
  0xf6   : > { %p3041_p4 = scmp.ne.s32.totalorder %s3539_s30, %s3040_s4  ;;  %p3046_p0 = scmp.lt.u32.totalorder %s3539_s30, %s3914_s22 }
  0xf7   : > { %p3047_p7 = scmp.lt.u32.totalorder %s3045_s21, %s3040_s4  ;;  %p3049_p8 = scmp.lt.u32.totalorder %s3040_s4, %s3539_s30 }
  0xf8   : > { %p3043_p9 = pnand %p3041_p4, %p3012_p1 }
  0xf9   : > { %p3048_p5 = por %p3047_p7, %p3046_p0 }
  0xfa   : > { %p3044_p11 = pneg %p3043_p9 }
  0xfb   : > { %p3050_p3 = por %p3049_p8, %p3048_p5 }
  0xfd   : > { %p3051_p12 = pnand %p3050_p3, %p3044_p11 }
  0xff   : > { %3054 = shalt.err (!%p3051_p12)
}
 0x100   : > { %s3055_s8 = scalar_lea.vmem %s627_s2, 128  ;;  %s3183_s25 = smov [#allocation8]  }
 0x101   : > { %p3056_p6 = scmp.ne.s32.totalorder %s627_s2, %s3055_s8  ;;  %s3060_s14 = sshll.u32 %s3183_s25, 4  ;;  %s3061_s14 = int_to_ptr.vmem [resolvable:$false] %s3060_s14 }
 0x102   : > { %s3062_s26 = scalar_lea.vmem %s3061_s14, 256  ;;  %p3063_p9 = scmp.lt.s32.totalorder %s627_s2, %s3061_s14 }
 0x103   : > { %p3058_p13 = pnand %p3056_p6, %p3012_p1  ;;  %p3064_p2 = scmp.lt.s32.totalorder %s3062_s26, %s3055_s8 }
 0x105   : > { %p3059_p4 = pneg %p3058_p13  ;;  %p3065_p0 = por %p3064_p2, %p3063_p9 }
 0x107   : > { %p3066_p7 = pnand %p3065_p0, %p3059_p4 }
 0x109   : > { %3069 = shalt.err (!%p3066_p7)
}
 0x10a   : > { %2688 = dma.hbm_to_vmem [thread:$0]  (!%p3530_p10), %s3539_s30, 128, %s627_s2, %s615_s13  }
 0x10b   : > { %p3915_p11 = scmp.ne.s32.totalorder %s3896_s20, 0 }
 0x10c   : > { %s3590_s10 = sand.u32 (!%p3915_p11), 1, %s3156_s28   ;;  %p3916_p2 = scmp.ne.s32.totalorder (!%p3915_p11), %s3908_s16, 0 }
 0x10d   : > { %635 = sbr.rel (%p3915_p11) target bundleno = 4151 (0x1037), region = 92  ;;  %s3593_s12 = sshll.u32 (!%p3915_p11), %s3590_s10, 3 }
 0x10e   : > { %s638_s4 = scalar_lea.sflag (!%p3915_p11), [#allocation6], %s3590_s10  ;;  %s641_s11 = scalar_lea.vmem (!%p3915_p11), [#allocation5], %s3593_s12 }
 0x114   : > { %3123 = dma.done.wait (%p3916_p2), %s638_s4, 128  }
 0x115   : > { %3125 = vsyncadd (%p3916_p2), %s638_s4, 4294967168  ;;  %s646_s20 = sand.u32 1, %s3316_s1   ;;  %s650_s30 = scalar_lea.vmem [#allocation8], %s3593_s12 }
 0x116   : > { %s647_s18 = scalar_lea.sflag [#allocation9], %s646_s20 }
 0x117   : > { %3127 = dma.done.wait (%p3916_p2), %s647_s18, 128  }
 0x118   : > { %3129 = vsyncadd (%p3916_p2), %s647_s18, 4294967168  ;;  %p3917_p10 = scmp.eq.s32.totalorder %s3316_s1, 0 }
 0x11a   : > { %3131 = dma.done.wait (%p3917_p10), [#allocation9], 1024   ;;  %p3918_p1 = pmov %p3917_p10 }
 0x11c   : > { %3133 = vsyncadd (%p3918_p1), [#allocation9], 4294966272  ;;  %p3919_p5 = pmov %p3918_p1 }
 0x11d   : > { %p3920_p8 = pmov %p3918_p1 }
 0x11e   : > { %3135 = dma.done.wait (%p3919_p5), [#allocation12], 2048  }
 0x11f   : > { %3137 = vsyncadd (%p3920_p8), [#allocation12], 4294965248  ;;  %p3921_p3 = pmov %p3918_p1 }
 0x120   : > { %p3922_p12 = pmov %p3918_p1 }
 0x121   : > { %3139 = dma.done.wait (%p3921_p3), [#allocation15], 2048  }
 0x122   : > { %3141 = vsyncadd (%p3922_p12), [#allocation15], 4294965248  ;;  %p3923_p6 = pmov %p3918_p1 }
 0x123   : > { %p3924_p13 = pmov %p3918_p1 }
 0x124   : > { %3143 = dma.done.wait (%p3923_p6), [#allocation18], 1024  }
 0x125   : > { %3145 = vsyncadd (%p3924_p13), [#allocation18], 4294966272  ;;  %v3184_v0 = vmov 0.0   ;;  %vm3185_vm0 = vmmov 0   ;;  %v2768_v1 = vld [vmem:[#allocation11] sm:$0xff]   ;;  %v2769_v2 = vld [vmem:[#allocation11 + $0x8] sm:$0xff]  }
 0x126   : > { %2453 = vmatprep.subr.bf16.mxu0 %v3184_v0  ;;  %2469 = vmatprep.mubr.msk.bf16.mxu0 %vm3185_vm0, %v3184_v0  ;;  %v2770_v3 = vld [vmem:[#allocation11 + $0x10] sm:$0xff]   ;;  %v2771_v4 = vld [vmem:[#allocation11 + $0x18] sm:$0xff]   ;;  %v2772_v5 = vld [vmem:[#allocation11 + $0x20] sm:$0xff]   ;;  %vm1082_vm1 = vcmask 261120   ;;  %s3186_s2 = smov 96   ;;  %s3925_s17 = sld [smem:[#allocation34_spill]] }
 0x127   : > { %2473 = vmatprep.subr.bf16.mxu1 %v3184_v0  ;;  %2489 = vmatprep.mubr.msk.bf16.mxu1 %vm3185_vm0, %v3184_v0  ;;  %v2784_v6 = vld [vmem:[#allocation13] sm:$0xff]   ;;  %v2773_v7 = vld [vmem:[#allocation11 + $0x28] sm:$0xff]   ;;  %v2774_v9 = vld [vmem:[#allocation11 + $0x30] sm:$0xff]   ;;  %vm1146_vm2 = vcmask 1043456   ;;  %vm1130_vm3 = vcmask 64512   ;;  %s3187_s8 = smov 64  }
 0x128   : > { %2454 = vmatpush3.bf16.msra.mxu0 %v2768_v1  ;;  %2474 = vmatpush3.bf16.msra.mxu1 %v2784_v6  ;;  %v2785_v8 = vld [vmem:[#allocation13 + $0x8] sm:$0xff]   ;;  %v2786_v10 = vld [vmem:[#allocation13 + $0x10] sm:$0xff]   ;;  %v2775_v11 = vld [vmem:[#allocation11 + $0x38] sm:$0xff]   ;;  %s3188_s25 = smov 32   ;;  %s3926_s4 = sld [smem:[#allocation36_spill]] }
 0x129   : > { %2455 = vmatprep.subr.bf16.mxu0 %v3184_v0  ;;  %2475 = vmatprep.subr.bf16.mxu1 %v3184_v0  ;;  %v737_v12 = vld [vmem:[%s641_s11] sm:$0xff]  ;;  %v2787_v13 = vld [vmem:[#allocation13 + $0x18] sm:$0xff]   ;;  %v2778_v19 = vld [vmem:[#allocation10 + $0x10] sm:$0xff]   ;;  %s3927_s18 = sld [smem:[#allocation41_spill]]  ;;  %s3928_s16 = sld [smem:[#allocation42_spill]] }
 0x12a   : > { %v2776_v14 = vld [vmem:[#allocation10] sm:$0xff]   ;;  %v738_v15 = vpack.c.bf16 %v737_v12, %v737_v12  ;;  %v2777_v17 = vld [vmem:[#allocation10 + $0x8] sm:$0xff]   ;;  %v2779_v20 = vld [vmem:[#allocation10 + $0x18] sm:$0xff]   ;;  %s3929_s6 = sld [smem:[#allocation38_spill]]  ;;  %s3932_s26 = sld [smem:[#allocation43_spill]] }
 0x12b   : > { %v2788_v16 = vld [vmem:[#allocation13 + $0x20] sm:$0xff]   ;;  %v2789_v18 = vld [vmem:[#allocation13 + $0x28] sm:$0xff]   ;;  %v2782_v23 = vld [vmem:[#allocation10 + $0x30] sm:$0xff]   ;;  %s3933_s20 = sld [smem:[#allocation44_spill]]  ;;  %s3934_s13 = sld [smem:[#allocation45_spill]] }
 0x12c   : > { %2456 = vmatpush3.bf16.msra.mxu0 %v2769_v2  ;;  %2476 = vmatpush3.bf16.msra.mxu1 %v2785_v8  ;;  %v2780_v21 = vld [vmem:[#allocation10 + $0x20] sm:$0xff]   ;;  %v2781_v22 = vld [vmem:[#allocation10 + $0x28] sm:$0xff]   ;;  %v2783_v24 = vld [vmem:[#allocation10 + $0x38] sm:$0xff]   ;;  %s2102_s21 = scalar_lea.sflag [#allocation7], %s3590_s10  ;;  %p3935_p9 = scmp.ne.s32.totalorder %s3909_s7, 0 }
 0x12d   : > { %2457 = vmatprep.subr.bf16.mxu0 %v3184_v0  ;;  %2477 = vmatprep.subr.bf16.mxu1 %v3184_v0  ;;  %v3655_v25 = vld [vmem:[%s650_s30] sm:$0xff]  ;;  %v2793_v6 = vld [vmem:[#allocation14] sm:$0xff]   ;;  %v2794_v8 = vld [vmem:[#allocation14 + $0x8] sm:$0xff]   ;;  %s731_s30 = scalar_lea.vmem [#allocation19], %s3593_s12  ;;  %s3189_s12 = smov [#allocation19]  }
 0x12e   : > { %v966_v26 = vpack.c.bf16 %v3655_v25, %v3655_v25  ;;  %v2790_v27 = vld [vmem:[#allocation13 + $0x30] sm:$0xff]   ;;  %v2791_v28 = vld [vmem:[#allocation13 + $0x38] sm:$0xff]   ;;  %s2116_s1 = sshll.u32 %s731_s30, 4  ;;  %s3802_s1 = int_to_ptr.vmem [resolvable:$true] %s2116_s1 }
 0x12f   : > { %v2300_v29 = vld [vmem:[%s3854_s5] ss:$0 sm:$0xff]  ;;  %s3070_s23 = scalar_lea.vmem %s3802_s1, 128 }
 0x130   : > { %2458 = vmatpush3.bf16.msra.mxu0 %v2770_v3  ;;  %2478 = vmatpush3.bf16.msra.mxu1 %v2786_v10  ;;  %v2318_v39 = vld [vmem:[%s3852_s3] ss:$0 sm:$0xff]  ;;  %p3071_p4 = scmp.ne.s32.totalorder %s3802_s1, %s3070_s23 }
 0x131   : > { %2459 = vmatprep.subr.bf16.mxu0 %v3184_v0  ;;  %2479 = vmatprep.subr.bf16.mxu1 %v3184_v0  ;;  %v2309_v46 = vld [vmem:[%s3925_s17] ss:$0 sm:$0xff]  ;;  %s3930_s17 = sld [smem:[#allocation40_spill]] }
 0x132   : > { %p3072_p0 = pnand %p3071_p4, %p3935_p9 }
 0x134   : > { %2460 = vmatpush3.bf16.msra.mxu0 %v2771_v4  ;;  %2480 = vmatpush3.bf16.msra.mxu1 %v2787_v13  ;;  %p3073_p7 = pneg %p3072_p0 }
 0x135   : > { %2461 = vmatprep.subr.bf16.mxu0 %v3184_v0  ;;  %2481 = vmatprep.subr.bf16.mxu1 %v3184_v0 }
 0x138   : > { %2462 = vmatpush3.bf16.msra.mxu0 %v2772_v5  ;;  %2482 = vmatpush3.bf16.msra.mxu1 %v2788_v16 }
 0x139   : > { %2463 = vmatprep.subr.bf16.mxu0 %v3184_v0  ;;  %2483 = vmatprep.subr.bf16.mxu1 %v3184_v0 }
 0x13c   : > { %2464 = vmatpush3.bf16.msra.mxu0 %v2773_v7  ;;  %2484 = vmatpush3.bf16.msra.mxu1 %v2789_v18 }
 0x13d   : > { %2465 = vmatprep.subr.bf16.mxu0 %v3184_v0  ;;  %2485 = vmatprep.subr.bf16.mxu1 %v3184_v0 }
 0x140   : > { %2466 = vmatpush3.bf16.msra.mxu0 %v2774_v9  ;;  %2486 = vmatpush3.bf16.msra.mxu1 %v2790_v27 }
 0x141   : > { %2467 = vmatprep.subr.bf16.mxu0 %v3184_v0  ;;  %2487 = vmatprep.subr.bf16.mxu1 %v3184_v0 }
 0x144   : > { %2468 = vmatpush3.bf16.msra.mxu0 %v2775_v11  ;;  %2488 = vmatpush3.bf16.msra.mxu1 %v2791_v28 }
 0x145   : > { %2493 = vmatprep.subr.bf16.mxu0 %v3184_v0  ;;  %2513 = vmatprep.subr.bf16.mxu1 %v3184_v0 }
 0x147   : > { %2470 = vmatmul.mubr.bf16.vlgmr.msra.gmra.mrb[0].mxu0 %v738_v15  ;;  %2490 = vmatmul.mubr.bf16.vlgmr.msra.gmra.mrb[0].mxu1 %v738_v15 }
 0x148   : > { %2494 = vmatpush3.bf16.msra.mxu0 %v2776_v14  ;;  %2509 = vmatprep.mubr.msk.bf16.mxu0 %vm3185_vm0, %v3184_v0 }
 0x149   : > { %2495 = vmatprep.subr.bf16.mxu0 %v3184_v0  ;;  %2515 = vmatprep.mubr.msk.bf16.mxu1 %vm3185_vm0, %v3184_v0 }
 0x14c   : > { %2496 = vmatpush3.bf16.msra.mxu0 %v2777_v17 }
 0x14d   : > { %2497 = vmatprep.subr.bf16.mxu0 %v3184_v0 }
 0x150   : > { %2498 = vmatpush3.bf16.msra.mxu0 %v2778_v19 }
 0x151   : > { %2499 = vmatprep.subr.bf16.mxu0 %v3184_v0 }
 0x154   : > { %2500 = vmatpush3.bf16.msra.mxu0 %v2779_v20 }
 0x155   : > { %2501 = vmatprep.subr.bf16.mxu0 %v3184_v0 }
 0x158   : > { %2502 = vmatpush3.bf16.msra.mxu0 %v2780_v21 }
 0x159   : > { %2503 = vmatprep.subr.bf16.mxu0 %v3184_v0 }
 0x15c   : > { %2504 = vmatpush3.bf16.msra.mxu0 %v2781_v22 }
 0x15d   : > { %2505 = vmatprep.subr.bf16.mxu0 %v3184_v0 }
 0x160   : > { %2506 = vmatpush3.bf16.msra.mxu0 %v2782_v23 }
 0x161   : > { %2507 = vmatprep.subr.bf16.mxu0 %v3184_v0 }
 0x164   : > { %2508 = vmatpush3.bf16.msra.mxu0 %v2783_v24 }
 0x165   : > { %2539 = vmatprep.subr.bf16.mxu0 %v3184_v0 }
 0x167   : > { %2510 = vmatmul.mubr.bf16.vlgmr.msra.gmra.mrb[4].mxu0 %v966_v26 }
 0x168   : > { %2541 = vmatprep.mubr.msk.bf16.mxu0 %vm3185_vm0, %v3184_v0 }
 0x21a   : > { %v844_v30 = vpop.f32.mrb[0].mxu0  ;;  %v955_v47 = vpop.f32.mrb[0].mxu1 }
 0x21b   : > { %v845_v31 = vadd.f32 %v2300_v29, %v844_v30  ;;  %v2471_v32 = vpop.f32.mrb[1].mxu0  ;;  %v956_v48 = vadd.f32 %v2309_v46, %v955_v47  ;;  %v2491_v49 = vpop.f32.mrb[1].mxu1 }
 0x21c   : > { %v847_v33 = vpop.f32.mrb[2].mxu0  ;;  %v958_v50 = vpop.f32.mrb[2].mxu1 }
 0x21d   : > { %v961_v34 = vpack.c.bf16 %v845_v31, %v845_v31  ;;  %v2472_v35 = vpop.f32.mrb[3].mxu0  ;;  %v963_v51 = vpack.c.bf16 %v956_v48, %v956_v48  ;;  %v2492_v52 = vpop.f32.mrb[3].mxu1 }
 0x21f   : > { %962 = vst [vmem:[#allocation2] sm:$0xf] %v961_v34  ;;  %964 = vst [vmem:[#allocation3] sm:$0xf] %v963_v51 }
 0x226   : > { %v1080_v36 = vld [vmem:[#allocation2] sm:$0xf]  ;;  %v1081_v53 = vld [vmem:[#allocation3] sm:$0xf] }
 0x227   : > { %v2792_v37 = vld [vmem:[#allocation2] ss:$0 sps:$4 sm:$0xff]   ;;  %v1087_v38 = vsel %vm1082_vm1, %v1080_v36, 0  ;;  %v1148_v54 = vsel %vm1146_vm2, %v1081_v53, 0  ;;  %v2795_v28 = vld [vmem:[#allocation3] ss:$0 sps:$4 sm:$0xff]  }
 0x228   : > { %2514 = vmatpush3.bf16.xpose.msra.mxu1 %v1087_v38  ;;  %1261 = vrot.lane.b32.xlu1 %v2792_v37, %s3186_s2  ;;  %v2796_v29 = vld [vmem:[#allocation2] ss:$0 sps:$4 sm:$0xff]   ;;  %v2797_v37 = vld [vmem:[#allocation3] ss:$0 sps:$4 sm:$0xff]   ;;  %v2798_v38 = vld [vmem:[#allocation14 + $0x10] sm:$0xff]  }
 0x229   : > { %2519 = vmatprep.subr.bf16.mxu1 %v3184_v0 }
 0x23a   : > { %v1072_v40 = vpop.f32.mrb[4].mxu0 }
 0x23b   : > { %v1073_v41 = vadd.f32 %v2318_v39, %v1072_v40  ;;  %v2511_v42 = vpop.f32.mrb[5].mxu0  ;;  %v2799_v39 = vld [vmem:[#allocation14 + $0x18] sm:$0xff]  }
 0x23c   : > { %v1075_v43 = vpop.f32.mrb[6].mxu0 }
 0x23d   : > { %v3676_v44 = vpack.c.bf16 %v1073_v41, %v1073_v41  ;;  %v2512_v45 = vpop.f32.mrb[7].mxu0 }
 0x23f   : > { %1256 = vrot.lane.b32.xlu1 %v3676_v44, %s3186_s2  ;;  %2516 = vmatmul.mubr.msk.bf16.vlgmr.msra.gmra.mrb[4].mxu1 %vm1082_vm1, %v3676_v44 }
 0x240   : > { %2521 = vmatprep.mubr.msk.bf16.mxu1 %vm3185_vm0, %v3184_v0  ;;  %2520 = vmatpush3.bf16.msra.mxu1 %v1148_v54 }
 0x241   : > { %2525 = vmatprep.subr.bf16.mxu1 %v3184_v0 }
 0x29a   : > { %v1262_v9 = vpop.permute.xlu1 %1261 }
 0x29b   : > { %v1267_v14 = vsel %vm1082_vm1, %v1262_v9, 0 }
 0x2b1   : > { %v1257_v16 = vpop.permute.xlu1 %1256 }
 0x312   : > { %v1123_v55 = vpop.f32.mrb[4].mxu1 }
 0x313   : > { %v1129_v56 = vmul.f32 0.35355338, %v1123_v55  ;;  %v2517_v57 = vpop.f32.mrb[5].mxu1 }
 0x314   : > { %v1126_v58 = vpop.f32.mrb[6].mxu1 }
 0x315   : > { %v2518_v59 = vpop.f32.mrb[7].mxu1  ;;  %v1131_v60 = vsel %vm1130_vm3, %v1129_v56, -inf }
 0x316   : > { %1132 = vmax.xlane.f32.xlu0 %v1131_v60 }
 0x3a3   : > { %v1133_v61 = vpop.xlane.xlu0 %1132 }
 0x3a4   : > { %v1134_v62 = vsub.f32 %v1129_v56, %v1133_v61 }
 0x3a6   : > { %v1135_v63 = vmul.f32 1.442695, %v1134_v62 }
 0x3a8   : > { %2822 = vpow2.f32 %v1135_v63 }
 0x3b2   : > { %v2823_v1 = vpop.eup %2822 }
 0x3b3   : > { %v1137_v2 = vsel %vm1130_vm3, %v2823_v1, 0.0 }
 0x3b4   : > { %1138 = vadd.xlane.f32.xlu0 %v1137_v2 }
 0x441   : > { %v1139_v3 = vpop.xlane.xlu0 %1138 }
 0x442   : > { %2824 = vrcp.f32 %v1139_v3  ;;  %v2800_v3 = vld [vmem:[#allocation2] ss:$0 sps:$4 sm:$0xff]  }
 0x44c   : > { %v2825_v4 = vpop.eup %2824 }
 0x44d   : > { %v1141_v5 = vmul.f32 %v2825_v4, %v2823_v1  ;;  %v2801_v4 = vld [vmem:[#allocation14 + $0x20] sm:$0xff]  }
 0x44f   : > { %v1142_v7 = vpack.c.bf16 %v1141_v5, %v1141_v5 }
 0x451   : > { %2522 = vmatmul.mubr.msk.bf16.vlgmr.msra.gmra.mrb[8].mxu1 %vm1130_vm3, %v1142_v7 }
 0x452   : > { %2526 = vmatpush3.bf16.msra.mxu1 %v2793_v6  ;;  %2529 = vmatprep.mubr.msk.bf16.mxu1 %vm3185_vm0, %v3184_v0 }
 0x453   : > { %2527 = vmatprep.subr.bf16.mxu1 %v3184_v0 }
 0x456   : > { %2528 = vmatpush3.bf16.msra.mxu1 %v2794_v8 }
 0x457   : > { %2533 = vmatprep.subr.bf16.mxu1 %v3184_v0 }
 0x524   : > { %v1184_v10 = vpop.f32.mrb[8].mxu1 }
 0x525   : > { %v1191_v11 = vpack.c.bf16 %v1184_v10, %v1184_v10  ;;  %v2523_v12 = vpop.f32.mrb[9].mxu1 }
 0x526   : > { %v1187_v13 = vpop.f32.mrb[10].mxu1 }
 0x527   : > { %v2524_v15 = vpop.f32.mrb[11].mxu1  ;;  %2530 = vmatmul.mubr.msk.bf16.vlgmr.msra.gmra.mrb[12].mxu1 %vm1082_vm1, %v1191_v11 }
 0x528   : > { %2534 = vmatpush3.bf16.xpose.msra.mxu1 %v1267_v14  ;;  %2535 = vmatprep.mubr.msk.bf16.mxu1 %vm3185_vm0, %v3184_v0 }
 0x529   : > { %2545 = vmatprep.subr.bf16.mxu1 %v3184_v0 }
 0x52f   : > { %2536 = vmatmul.mubr.msk.bf16.vlgmr.msra.gmra.mrb[16].mxu1 %vm1082_vm1, %v1257_v16  ;;  %v2802_v16 = vld [vmem:[#allocation14 + $0x28] sm:$0xff]  }
 0x530   : > { %2549 = vmatprep.mubr.msk.bf16.mxu1 %vm3185_vm0, %v3184_v0  ;;  %2546 = vmatpush3.bf16.msra.mxu1 %v2798_v38  ;;  %v2805_v38 = vld [vmem:[#allocation14 + $0x38] sm:$0xff]  }
 0x531   : > { %2547 = vmatprep.subr.bf16.mxu1 %v3184_v0 }
 0x534   : > { %2548 = vmatpush3.bf16.msra.mxu1 %v2799_v39 }
 0x535   : > { %2559 = vmatprep.subr.bf16.mxu1 %v3184_v0 }
 0x5fa   : > { %v3704_v17 = vpop.f32.mrb[12].mxu1 }
 0x5fb   : > { %v2531_v18 = vpop.f32.mrb[13].mxu1 }
 0x5fc   : > { %v1248_v19 = vpop.f32.mrb[14].mxu1 }
 0x5fd   : > { %v2532_v20 = vpop.f32.mrb[15].mxu1 }
 0x602   : > { %v1303_v21 = vpop.f32.mrb[16].mxu1 }
 0x603   : > { %v1309_v22 = vmul.f32 0.35355338, %v1303_v21  ;;  %v2537_v23 = vpop.f32.mrb[17].mxu1 }
 0x604   : > { %v1306_v24 = vpop.f32.mrb[18].mxu1 }
 0x605   : > { %v2538_v26 = vpop.f32.mrb[19].mxu1  ;;  %v1310_v27 = vsel %vm1130_vm3, %v1309_v22, -inf }
 0x606   : > { %1311 = vmax.xlane.f32.xlu0 %v1310_v27 }
 0x61c   : > { %1325 = vrot.lane.b32.xlu0 %v2795_v28, %s3186_s2 }
 0x620   : > { %1443 = vrot.lane.b32.xlu0 %v2796_v29, %s3187_s8  ;;  %v2803_v29 = vld [vmem:[#allocation3] ss:$0 sps:$4 sm:$0xff]  }
 0x624   : > { %1438 = vrot.lane.b32.xlu0 %v3676_v44, %s3187_s8 }
 0x693   : > { %v1312_v30 = vpop.xlane.xlu0 %1311 }
 0x694   : > { %v1313_v31 = vsub.f32 %v1309_v22, %v1312_v30 }
 0x696   : > { %v1314_v32 = vmul.f32 1.442695, %v1313_v31 }
 0x697   : > { %v1326_v33 = vpop.permute.xlu0 %1325 }
 0x698   : > { %2826 = vpow2.f32 %v1314_v32  ;;  %v1331_v34 = vsel %vm1146_vm2, %v1326_v33, 0 }
 0x699   : > { %2540 = vmatpush3.bf16.msra.mxu0 %v1331_v34 }
 0x69a   : > { %2553 = vmatprep.subr.bf16.mxu0 %v3184_v0 }
 0x69b   : > { %v1444_v43 = vpop.permute.xlu0 %1443 }
 0x69c   : > { %v1449_v46 = vsel %vm1082_vm1, %v1444_v43, 0 }
 0x69f   : > { %v1439_v47 = vpop.permute.xlu0 %1438 }
 0x6a2   : > { %v2827_v35 = vpop.eup %2826 }
 0x6a3   : > { %v1316_v36 = vsel %vm1130_vm3, %v2827_v35, 0.0 }
 0x6a4   : > { %1317 = vadd.xlane.f32.xlu1 %v1316_v36 }
 0x6b5   : > { %1507 = vrot.lane.b32.xlu1 %v2797_v37, %s3187_s8  ;;  %v2804_v37 = vld [vmem:[#allocation14 + $0x30] sm:$0xff]   ;;  %s3931_s8 = sld [smem:[#allocation27_spill]] }
 0x731   : > { %v1318_v40 = vpop.xlane.xlu1 %1317 }
 0x732   : > { %2828 = vrcp.f32 %v1318_v40 }
 0x735   : > { %v1508_v48 = vpop.permute.xlu1 %1507 }
 0x736   : > { %v1513_v53 = vsel %vm1146_vm2, %v1508_v48, 0 }
 0x73c   : > { %v2829_v41 = vpop.eup %2828 }
 0x73d   : > { %v1320_v42 = vmul.f32 %v2829_v41, %v2827_v35 }
 0x73f   : > { %v1321_v45 = vpack.c.bf16 %v1320_v42, %v1320_v42 }
 0x741   : > { %2542 = vmatmul.mubr.msk.bf16.vlgmr.msra.gmra.mrb[8].mxu0 %vm1130_vm3, %v1321_v45 }
 0x742   : > { %2554 = vmatpush3.bf16.xpose.msra.mxu0 %v1449_v46  ;;  %2555 = vmatprep.mubr.msk.bf16.mxu0 %vm3185_vm0, %v3184_v0 }
 0x743   : > { %2565 = vmatprep.subr.bf16.mxu0 %v3184_v0 }
 0x749   : > { %2556 = vmatmul.mubr.msk.bf16.vlgmr.msra.gmra.mrb[12].mxu0 %vm1082_vm1, %v1439_v47 }
 0x74a   : > { %2569 = vmatprep.mubr.msk.bf16.mxu0 %vm3185_vm0, %v3184_v0  ;;  %2566 = vmatpush3.bf16.msra.mxu0 %v2801_v4  ;;  %v2810_v4 = vld [vmem:[#allocation16 + $0x20] sm:$0xff]  }
 0x74b   : > { %2567 = vmatprep.subr.bf16.mxu0 %v3184_v0 }
 0x74e   : > { %2568 = vmatpush3.bf16.msra.mxu0 %v2802_v16 }
 0x74f   : > { %2579 = vmatprep.subr.bf16.mxu0 %v3184_v0 }
 0x814   : > { %v1367_v49 = vpop.f32.mrb[8].mxu0 }
 0x815   : > { %v1374_v50 = vpack.c.bf16 %v1367_v49, %v1367_v49  ;;  %v2543_v51 = vpop.f32.mrb[9].mxu0 }
 0x816   : > { %v1370_v52 = vpop.f32.mrb[10].mxu0 }
 0x817   : > { %v2544_v54 = vpop.f32.mrb[11].mxu0  ;;  %2550 = vmatmul.mubr.msk.bf16.vlgmr.msra.gmra.mrb[20].mxu1 %vm1082_vm1, %v1374_v50 }
 0x818   : > { %2560 = vmatpush3.bf16.msra.mxu1 %v1513_v53  ;;  %2561 = vmatprep.mubr.msk.bf16.mxu1 %vm3185_vm0, %v3184_v0  ;;  %v2806_v54 = vld [vmem:[#allocation16] sm:$0xff]  }
 0x819   : > { %2573 = vmatprep.subr.bf16.mxu1 %v3184_v0 }
 0x81c   : > { %v1485_v55 = vpop.f32.mrb[12].mxu0 }
 0x81d   : > { %v1491_v56 = vmul.f32 0.35355338, %v1485_v55  ;;  %v2557_v57 = vpop.f32.mrb[13].mxu0 }
 0x81e   : > { %v1488_v58 = vpop.f32.mrb[14].mxu0 }
 0x81f   : > { %v2558_v59 = vpop.f32.mrb[15].mxu0  ;;  %v1492_v60 = vsel %vm1130_vm3, %v1491_v56, -inf }
 0x820   : > { %1493 = vmax.xlane.f32.xlu0 %v1492_v60 }
 0x8ad   : > { %v1494_v61 = vpop.xlane.xlu0 %1493 }
 0x8ae   : > { %v1495_v62 = vsub.f32 %v1491_v56, %v1494_v61  ;;  %v2353_v56 = vld [vmem:[%s3926_s4] ss:$0 sm:$0xff] }
 0x8b0   : > { %v1496_v63 = vmul.f32 1.442695, %v1495_v62 }
 0x8b2   : > { %2830 = vpow2.f32 %v1496_v63 }
 0x8bc   : > { %v2831_v1 = vpop.eup %2830 }
 0x8bd   : > { %v1498_v2 = vsel %vm1130_vm3, %v2831_v1, 0.0 }
 0x8be   : > { %1499 = vadd.xlane.f32.xlu1 %v1498_v2  ;;  %v2808_v2 = vld [vmem:[#allocation16 + $0x10] sm:$0xff]  }
 0x8cf   : > { %1625 = vrot.lane.b32.xlu1 %v2800_v3, %s3188_s25  ;;  %v2809_v3 = vld [vmem:[#allocation16 + $0x18] sm:$0xff]  }
 0x8d3   : > { %1620 = vrot.lane.b32.xlu1 %v3676_v44, %s3188_s25 }
 0x8ea   : > { %v1428_v5 = vpop.f32.mrb[20].mxu1 }
 0x8eb   : > { %v1434_v6 = vadd.f32 %v1428_v5, %v3704_v17  ;;  %v2551_v7 = vpop.f32.mrb[21].mxu1  ;;  %v2811_v5 = vld [vmem:[#allocation16 + $0x28] sm:$0xff]  }
 0x8ec   : > { %v1431_v8 = vpop.f32.mrb[22].mxu1  ;;  %v2814_v7 = vld [vmem:[#allocation17] sm:$0xff]  }
 0x8ed   : > { %v2552_v9 = vpop.f32.mrb[23].mxu1  ;;  %v2815_v8 = vld [vmem:[#allocation17 + $0x8] sm:$0xff]  }
 0x8ee   : > { %v2816_v9 = vld [vmem:[#allocation17 + $0x10] sm:$0xff]  }
 0x94b   : > { %v1500_v10 = vpop.xlane.xlu1 %1499 }
 0x94c   : > { %2832 = vrcp.f32 %v1500_v10  ;;  %v2817_v10 = vld [vmem:[#allocation17 + $0x18] sm:$0xff]  }
 0x94f   : > { %v1626_v13 = vpop.permute.xlu1 %1625 }
 0x950   : > { %v1631_v15 = vsel %vm1082_vm1, %v1626_v13, 0 }
 0x953   : > { %v1621_v44 = vpop.permute.xlu1 %1620 }
 0x956   : > { %v2833_v11 = vpop.eup %2832 }
 0x957   : > { %v1502_v12 = vmul.f32 %v2833_v11, %v2831_v1  ;;  %v2807_v1 = vld [vmem:[#allocation16 + $0x8] sm:$0xff]   ;;  %v2818_v11 = vld [vmem:[#allocation17 + $0x20] sm:$0xff]  }
 0x959   : > { %v1503_v14 = vpack.c.bf16 %v1502_v12, %v1502_v12  ;;  %v2819_v12 = vld [vmem:[#allocation17 + $0x28] sm:$0xff]  }
 0x95b   : > { %2562 = vmatmul.mubr.msk.bf16.vlgmr.msra.gmra.mrb[24].mxu1 %vm1130_vm3, %v1503_v14 }
 0x95c   : > { %2574 = vmatpush3.bf16.xpose.msra.mxu1 %v1631_v15  ;;  %2575 = vmatprep.mubr.msk.bf16.mxu1 %vm3185_vm0, %v3184_v0 }
 0x95d   : > { %2585 = vmatprep.subr.bf16.mxu1 %v3184_v0 }
 0x963   : > { %2576 = vmatmul.mubr.msk.bf16.vlgmr.msra.gmra.mrb[28].mxu1 %vm1082_vm1, %v1621_v44 }
 0x964   : > { %2589 = vmatprep.mubr.msk.bf16.mxu1 %vm3185_vm0, %v3184_v0  ;;  %2586 = vmatpush3.bf16.msra.mxu1 %v2804_v37 }
 0x965   : > { %2587 = vmatprep.subr.bf16.mxu1 %v3184_v0 }
 0x968   : > { %2588 = vmatpush3.bf16.msra.mxu1 %v2805_v38  ;;  %v2373_v38 = vld [vmem:[%s3930_s17] ss:$0 sm:$0xff]  ;;  %s3074_s17 = sshll.u32 %s3189_s12, 4  ;;  %s3075_s17 = int_to_ptr.vmem [resolvable:$false] %s3074_s17 }
 0x969   : > { %2613 = vmatprep.subr.bf16.mxu1 %v3184_v0  ;;  %p3077_p11 = scmp.lt.s32.totalorder %s3802_s1, %s3075_s17 }
 0xa2e   : > { %v1549_v17 = vpop.f32.mrb[24].mxu1 }
 0xa2f   : > { %v1556_v18 = vpack.c.bf16 %v1549_v17, %v1549_v17  ;;  %v2563_v19 = vpop.f32.mrb[25].mxu1 }
 0xa30   : > { %v1552_v20 = vpop.f32.mrb[26].mxu1 }
 0xa31   : > { %v2564_v21 = vpop.f32.mrb[27].mxu1  ;;  %2570 = vmatmul.mubr.msk.bf16.vlgmr.msra.gmra.mrb[16].mxu0 %vm1082_vm1, %v1556_v18 }
 0xa32   : > { %2581 = vmatprep.mubr.msk.bf16.mxu0 %vm3185_vm0, %v3184_v0  ;;  %v2354_v21 = vld [vmem:[%s3927_s18] ss:$0 sm:$0xff]  ;;  %s2377_s18 = sshll.u32 %s3931_s8, 7  ;;  %s3076_s8 = scalar_lea.vmem %s3075_s17, 256 }
 0xa33   : > { %p3078_p2 = scmp.lt.s32.totalorder %s3076_s8, %s3070_s23 }
 0xa35   : > { %p3079_p10 = por %p3078_p2, %p3077_p11 }
 0xa36   : > { %v1667_v22 = vpop.f32.mrb[28].mxu1 }
 0xa37   : > { %v1673_v23 = vmul.f32 0.35355338, %v1667_v22  ;;  %v2577_v24 = vpop.f32.mrb[29].mxu1  ;;  %p3080_p1 = pnand %p3079_p10, %p3073_p7 }
 0xa38   : > { %v1670_v26 = vpop.f32.mrb[30].mxu1 }
 0xa39   : > { %v2578_v27 = vpop.f32.mrb[31].mxu1  ;;  %v1674_v28 = vsel %vm1130_vm3, %v1673_v23, -inf }
 0xa3a   : > { %1675 = vmax.xlane.f32.xlu0 %v1674_v28  ;;  %v2820_v28 = vld [vmem:[#allocation17 + $0x30] sm:$0xff]  }
 0xa50   : > { %1689 = vrot.lane.b32.xlu0 %v2803_v29, %s3188_s25  ;;  %v2821_v29 = vld [vmem:[#allocation17 + $0x38] sm:$0xff]  }
 0xac7   : > { %v1676_v30 = vpop.xlane.xlu0 %1675 }
 0xac8   : > { %v1677_v31 = vsub.f32 %v1673_v23, %v1676_v30  ;;  %v2355_v23 = vld [vmem:[%s3928_s16] ss:$0 sm:$0xff] }
 0xac9   : > { %v2356_v30 = vld [vmem:[%s3929_s6] ss:$0 sm:$0xff]  ;;  %s3800_s6 = scalar_lea.hbm %s3934_s13, %s2377_s18 }
 0xaca   : > { %v1678_v32 = vmul.f32 1.442695, %v1677_v31 }
 0xacb   : > { %v1690_v33 = vpop.permute.xlu0 %1689 }
 0xacc   : > { %2834 = vpow2.f32 %v1678_v32  ;;  %v1695_v34 = vsel %vm1146_vm2, %v1690_v33, 0 }
 0xacd   : > { %2580 = vmatpush3.bf16.msra.mxu0 %v1695_v34 }
 0xace   : > { %2593 = vmatprep.subr.bf16.mxu0 %v3184_v0 }
 0xad6   : > { %v2835_v35 = vpop.eup %2834 }
 0xad7   : > { %v1680_v36 = vsel %vm1130_vm3, %v2835_v35, 0.0 }
 0xad8   : > { %1681 = vadd.xlane.f32.xlu1 %v1680_v36 }
 0xb04   : > { %v1610_v39 = vpop.f32.mrb[16].mxu0 }
 0xb05   : > { %v1616_v40 = vadd.f32 %v1610_v39, %v1434_v6  ;;  %v2571_v41 = vpop.f32.mrb[17].mxu0  ;;  %v2813_v6 = vld [vmem:[#allocation16 + $0x38] sm:$0xff]  }
 0xb06   : > { %v1613_v42 = vpop.f32.mrb[18].mxu0 }
 0xb07   : > { %v2572_v43 = vpop.f32.mrb[19].mxu0 }
 0xb65   : > { %v1682_v45 = vpop.xlane.xlu1 %1681 }
 0xb66   : > { %2836 = vrcp.f32 %v1682_v45 }
 0xb70   : > { %v2837_v46 = vpop.eup %2836 }
 0xb71   : > { %v1684_v47 = vmul.f32 %v2837_v46, %v2835_v35 }
 0xb73   : > { %v1685_v48 = vpack.c.bf16 %v1684_v47, %v1684_v47 }
 0xb75   : > { %2582 = vmatmul.mubr.msk.bf16.vlgmr.msra.gmra.mrb[20].mxu0 %vm1130_vm3, %v1685_v48 }
 0xb76   : > { %2609 = vmatprep.mubr.msk.bf16.mxu0 %vm3185_vm0, %v3184_v0  ;;  %2594 = vmatpush3.bf16.msra.mxu0 %v2806_v54 }
 0xb77   : > { %2595 = vmatprep.subr.bf16.mxu0 %v3184_v0 }
 0xb7a   : > { %2596 = vmatpush3.bf16.msra.mxu0 %v2807_v1 }
 0xb7b   : > { %2597 = vmatprep.subr.bf16.mxu0 %v3184_v0 }
 0xb7e   : > { %2598 = vmatpush3.bf16.msra.mxu0 %v2808_v2 }
 0xb7f   : > { %2599 = vmatprep.subr.bf16.mxu0 %v3184_v0 }
 0xb82   : > { %2600 = vmatpush3.bf16.msra.mxu0 %v2809_v3 }
 0xb83   : > { %2601 = vmatprep.subr.bf16.mxu0 %v3184_v0 }
 0xb86   : > { %2602 = vmatpush3.bf16.msra.mxu0 %v2810_v4 }
 0xb87   : > { %2603 = vmatprep.subr.bf16.mxu0 %v3184_v0 }
 0xb8a   : > { %2604 = vmatpush3.bf16.msra.mxu0 %v2811_v5 }
 0xb8b   : > { %2605 = vmatprep.subr.bf16.mxu0 %v3184_v0 }
 0xc48   : > { %v1731_v49 = vpop.f32.mrb[20].mxu0 }
 0xc49   : > { %v1738_v50 = vpack.c.bf16 %v1731_v49, %v1731_v49  ;;  %v2583_v51 = vpop.f32.mrb[21].mxu0 }
 0xc4a   : > { %v1734_v52 = vpop.f32.mrb[22].mxu0 }
 0xc4b   : > { %v2584_v53 = vpop.f32.mrb[23].mxu0  ;;  %2590 = vmatmul.mubr.msk.bf16.vlgmr.msra.gmra.mrb[32].mxu1 %vm1082_vm1, %v1738_v50 }
 0xc4c   : > { %2629 = vmatprep.mubr.msk.bf16.mxu1 %vm3185_vm0, %v3184_v0  ;;  %2614 = vmatpush3.bf16.msra.mxu1 %v2814_v7 }
 0xc4d   : > { %2615 = vmatprep.subr.bf16.mxu1 %v3184_v0 }
 0xc50   : > { %2616 = vmatpush3.bf16.msra.mxu1 %v2815_v8 }
 0xc51   : > { %2617 = vmatprep.subr.bf16.mxu1 %v3184_v0 }
 0xc54   : > { %2618 = vmatpush3.bf16.msra.mxu1 %v2816_v9 }
 0xc55   : > { %2619 = vmatprep.subr.bf16.mxu1 %v3184_v0 }
 0xc58   : > { %2620 = vmatpush3.bf16.msra.mxu1 %v2817_v10 }
 0xc59   : > { %2621 = vmatprep.subr.bf16.mxu1 %v3184_v0 }
 0xc5c   : > { %2622 = vmatpush3.bf16.msra.mxu1 %v2818_v11 }
 0xc5d   : > { %2623 = vmatprep.subr.bf16.mxu1 %v3184_v0 }
 0xc60   : > { %2624 = vmatpush3.bf16.msra.mxu1 %v2819_v12 }
 0xc61   : > { %2625 = vmatprep.subr.bf16.mxu1 %v3184_v0 }
 0xc64   : > { %2626 = vmatpush3.bf16.msra.mxu1 %v2820_v28 }
 0xc65   : > { %2627 = vmatprep.subr.bf16.mxu1 %v3184_v0 }
 0xc68   : > { %2628 = vmatpush3.bf16.msra.mxu1 %v2821_v29 }
 0xd1e   : > { %v1792_v55 = vpop.f32.mrb[32].mxu1 }
 0xd1f   : > { %v1798_v57 = vadd.f32 %v1792_v55, %v1616_v40  ;;  %v2591_v58 = vpop.f32.mrb[33].mxu1  ;;  %v2374_v55 = vld [vmem:[%s3932_s26] ss:$0 sm:$0xff] }
 0xd20   : > { %v1795_v59 = vpop.f32.mrb[34].mxu1 }
 0xd21   : > { %v1808_v60 = vadd.f32 %v2353_v56, %v1798_v57  ;;  %v2592_v61 = vpop.f32.mrb[35].mxu1  ;;  %v2375_v57 = vld [vmem:[%s3933_s20] ss:$0 sm:$0xff] }
 0xd23   : > { %v1809_v62 = vadd.f32 %v1808_v60, %v3655_v25  ;;  %v2812_v25 = vld [vmem:[#allocation16 + $0x30] sm:$0xff]  }
 0xd24   : > { %2606 = vmatpush3.bf16.msra.mxu0 %v2812_v25 }
 0xd25   : > { %1812 = vadd.xlane.f32.xlu0 %v1809_v62  ;;  %v1814_v63 = vmul.f32 %v1809_v62, %v1809_v62  ;;  %2607 = vmatprep.subr.bf16.mxu0 %v3184_v0 }
 0xd27   : > { %1815 = vadd.xlane.f32.xlu1 %v1814_v63 }
 0xd28   : > { %2608 = vmatpush3.bf16.msra.mxu0 %v2813_v6 }
 0xdb2   : > { %v1813_v13 = vpop.xlane.xlu0 %1812 }
 0xdb3   : > { %v1817_v14 = vmul.f32 0.03125, %v1813_v13 }
 0xdb4   : > { %v1816_v15 = vpop.xlane.xlu1 %1815 }
 0xdb5   : > { %v1819_v44 = vmul.f32 %v1817_v14, %v1817_v14  ;;  %v1818_v16 = vmul.f32 0.03125, %v1816_v15  ;;  %v1821_v19 = vsub.f32 %v1809_v62, %v1817_v14 }
 0xdb7   : > { %v1820_v17 = vsub.f32 %v1818_v16, %v1819_v44 }
 0xdb9   : > { %v1822_v18 = vadd.f32 1e-05, %v1820_v17 }
 0xdbb   : > { %2838 = vrsqrt.f32 %v1822_v18 }
 0xdc5   : > { %v2839_v20 = vpop.eup %2838 }
 0xdc6   : > { %v1824_v22 = vmul.f32 %v2839_v20, %v1821_v19 }
 0xdc8   : > { %v1831_v24 = vmul.f32 %v2354_v21, %v1824_v22 }
 0xdca   : > { %v1838_v26 = vadd.f32 %v2355_v23, %v1831_v24 }
 0xdcc   : > { %v1839_v27 = vpack.c.bf16 %v1838_v26, %v1838_v26 }
 0xdce   : > { %2610 = vmatmul.mubr.bf16.vlgmr.msra.gmra.mrb[24].mxu0 %v1839_v27 }
 0xea1   : > { %v1946_v31 = vpop.f32.mrb[24].mxu0 }
 0xea2   : > { %v1947_v32 = vadd.f32 %v2356_v30, %v1946_v31  ;;  %v2611_v33 = vpop.f32.mrb[25].mxu0 }
 0xea3   : > { %v1949_v34 = vpop.f32.mrb[26].mxu0 }
 0xea4   : > { %v1952_v35 = vmax.f32 %v1947_v32, 0.0  ;;  %v2612_v36 = vpop.f32.mrb[27].mxu0 }
 0xea6   : > { %v1953_v37 = vpack.c.bf16 %v1952_v35, %v1952_v35 }
 0xea8   : > { %2630 = vmatmul.mubr.bf16.vlgmr.msra.gmra.mrb[36].mxu1 %v1953_v37 }
 0xf7b   : > { %v2053_v39 = vpop.f32.mrb[36].mxu1 }
 0xf7c   : > { %v2069_v0 = vadd.f32 %v2373_v38, %v2053_v39  ;;  %v2631_v40 = vpop.f32.mrb[37].mxu1 }
 0xf7d   : > { %v2056_v41 = vpop.f32.mrb[38].mxu1 }
 0xf7e   : > { %v2070_v42 = vadd.f32 %v2069_v0, %v1838_v26  ;;  %v2632_v43 = vpop.f32.mrb[39].mxu1 }
 0xf80   : > { %2073 = vadd.xlane.f32.xlu1 %v2070_v42  ;;  %v2075_v45 = vmul.f32 %v2070_v42, %v2070_v42 }
 0xf84   : > { %2076 = vadd.xlane.f32.xlu1 %v2075_v45 }
0x100d   : > { %v2074_v46 = vpop.xlane.xlu1 %2073 }
0x100e   : > { %v2078_v47 = vmul.f32 0.03125, %v2074_v46 }
0x1010   : > { %v2080_v49 = vmul.f32 %v2078_v47, %v2078_v47  ;;  %v2082_v53 = vsub.f32 %v2070_v42, %v2078_v47 }
0x1011   : > { %v2077_v48 = vpop.xlane.xlu1 %2076 }
0x1012   : > { %v2079_v50 = vmul.f32 0.03125, %v2077_v48 }
0x1014   : > { %v2081_v51 = vsub.f32 %v2079_v50, %v2080_v49 }
0x1016   : > { %v2083_v52 = vadd.f32 1e-05, %v2081_v51 }
0x1018   : > { %2840 = vrsqrt.f32 %v2083_v52 }
0x1022   : > { %v2841_v54 = vpop.eup %2840 }
0x1023   : > { %v2085_v56 = vmul.f32 %v2841_v54, %v2082_v53 }
0x1025   : > { %v2092_v58 = vmul.f32 %v2374_v55, %v2085_v56 }
0x1027   : > { %v2099_v59 = vadd.f32 %v2375_v57, %v2092_v58 }
0x1029   : > { %2100 = vst [vmem:[%s731_s30] sm:$0xff] %v2099_v59 }
0x102a   : > { %3083 = shalt.err (!%p3080_p1)
}
0x102b   : > { %s3084_s10 = scalar_lea.hbm %s3800_s6, 128  ;;  %s3088_s26 = scalar_lea.hbm %s3934_s13, 256 }
0x102c   : > { %p3085_p5 = scmp.ne.s32.totalorder %s3800_s6, %s3084_s10  ;;  %p3089_p12 = scmp.lt.u32.totalorder %s3800_s6, %s3934_s13 }
0x102d   : > { %p3090_p6 = scmp.lt.u32.totalorder %s3088_s26, %s3084_s10  ;;  %p3092_p4 = scmp.lt.u32.totalorder %s3084_s10, %s3800_s6 }
0x102e   : > { %p3086_p8 = pnand %p3085_p5, %p3935_p9 }
0x102f   : > { %p3091_p13 = por %p3090_p6, %p3089_p12 }
0x1030   : > { %p3087_p3 = pneg %p3086_p8 }
0x1031   : > { %p3093_p0 = por %p3092_p4, %p3091_p13 }
0x1033   : > { %p3094_p7 = pnand %p3093_p0, %p3087_p3 }
0x1035   : > { %3097 = shalt.err (!%p3094_p7)
}
0x1036   : > { %2661 = dma.vmem_to_hbm [thread:$0]  (%p3935_p9), %s3802_s1, 128, %s3800_s6, %s2102_s21  }
0x1037 PF: > { %s2128_s20 = sand.u32 1, %s3152_s27   ;;  %p3936_p11 = scmp.ne.s32.totalorder %s3910_s15, 0 }
0x1038   : > { %p3937_p2 = scmp.ge.s32.totalorder %s3172_s19, 2  ;;  %s2129_s18 = scalar_lea.sflag [#allocation7], %s2128_s20 }
0x103a   : > { %p2690_p10 = pnand %p3937_p2, %p3936_p11 }
0x103c   : > { %3147 = dma.done.wait (!%p2690_p10), %s2129_s18, 128  }
0x103d   : > { %3149 = vsyncadd (!%p2690_p10), %s2129_s18, 4294967168  ;;  %s40_s19 = sadd.s32 1, %s3172_s19   ;;  %s3938_s7 = sld [smem:[#allocation28_spill]] }
0x103e   : > { %p37_p1 = scmp.ge.s32.totalorder %s40_s19, 4   ;;  %s3939_s27 = smov %s3156_s28 }
0x103f   : > { %s3940_s28 = smov %s3160_s29  ;;  %s3941_s29 = smov %s3511_s9 }
0x1040   : > { %s3942_s30 = smov %s3168_s0  ;;  %39 = sbr.rel (!%p37_p1) target bundleno = 29 (0x1d), region = 178 }
0x1043   : > { %s3943_s0 = smov %s3938_s7 }
0x1047   :  { %2134 = vsyncpa [#allocation6], 1 }
0x1048   :  { %2136 = vsyncpa [#allocation6 + $0x1], 1 }
0x1049   :  { %2137 = vsyncpa [#allocation9], 1 }
0x104a   :  { %2139 = vsyncpa [#allocation9 + $0x1], 1 }
0x104b   :  { %2140 = vsyncpa [#allocation12], 1 }
0x104c   :  { %2141 = vsyncpa [#allocation15], 1 }
0x104d   :  { %2142 = vsyncpa [#allocation18], 1 }
0x104e   :  { %2143 = vsyncpa [#allocation7], 1 }
0x104f   :  { %2145 = vsyncpa [#allocation7 + $0x1], 1 }

</bundles_post_ra>
